<compile_context>
chip_gen: v5e
topology: v5e:2x2
jax: 0.10.0
libtpu: 0.0.40
codegen_flags: <defaults>
</compile_context>

<pallas_src>
import functools

import jax
import jax.numpy as jnp
from jax.experimental import pallas as pl
from jax.experimental.pallas import tpu as pltpu

LN_EPS = 1e-5
ACT_DTYPE = jnp.bfloat16          # activation storage dtype between kernels


def _vmem_limit_bytes():
    # Generation-aware VMEM budget: ~75% of per-core capacity.
    # Fallback (48 MiB) is safe on v7x's 64 MiB per-TC VMEM.
    cap = 64 * 1024 * 1024
    try:
        cap = int(pltpu.get_tpu_info().vmem_capacity_bytes)
    except Exception:
        pass
    return int(min(cap * 3 // 4, 100 * 1024 * 1024))


VMEM_LIMIT = _vmem_limit_bytes()


def _tile(dim, target, align):
    """Largest aligned divisor of `dim` that is <= target (or the full dim)."""
    if dim <= target:
        return dim
    t = (target // align) * align
    while t >= align:
        if dim % t == 0:
            return t
        t -= align
    return dim


def _row_tile(M, cap=1024):
    # Aim for >=2 row tiles (megacore-splittable on v7x) while keeping each tile
    # large; bounds weight re-streaming to ~#row-tiles per GEMM.
    target = min(cap, max(8, M // 2))
    return _tile(M, target, 8)


def _col_tile(N, cap=1536):
    # >=2 column tiles when N is large (keeps a parallel axis splittable without
    # adding weight traffic), each at least 128 lanes / lane-dense.
    target = max(128, min(cap, N // 2 if N >= 256 else N))
    return _tile(N, target, 128)


# --------------------------------------------------------------------- LayerNorm
def _ln_kernel(x_ref, g_ref, b_ref, o_ref):
    x = x_ref[...].astype(jnp.float32)
    mu = jnp.mean(x, axis=-1, keepdims=True)
    var = jnp.mean(jnp.square(x - mu), axis=-1, keepdims=True)
    y = (x - mu) * jax.lax.rsqrt(var + LN_EPS)
    o_ref[...] = (y * g_ref[...].astype(jnp.float32)
                  + b_ref[...].astype(jnp.float32)).astype(o_ref.dtype)


def layer_norm(x, gamma, beta, out_dtype=jnp.float32):
    M, D = x.shape
    tm = _row_tile(M)
    return pl.pallas_call(
        _ln_kernel,
        out_shape=jax.ShapeDtypeStruct((M, D), out_dtype),
        grid=(M // tm,),
        in_specs=[pl.BlockSpec((tm, D), lambda i: (i, 0)),
                  pl.BlockSpec((1, D), lambda i: (0, 0)),
                  pl.BlockSpec((1, D), lambda i: (0, 0))],
        out_specs=pl.BlockSpec((tm, D), lambda i: (i, 0)),
        compiler_params=pltpu.CompilerParams(
            dimension_semantics=("parallel",), vmem_limit_bytes=VMEM_LIMIT),
    )(x, gamma.reshape(1, D), beta.reshape(1, D))


# ------------------------------------------ fused LayerNorm -> matmul (+bias, +act)
def _ln_matmul_kernel(x_ref, g_ref, b_ref, w_ref, bias_ref, o_ref, xn_ref, *, act):
    # LayerNorm prologue hoisted: computed once per row tile (j == 0) into VMEM
    # scratch, reused for all N tiles.  N axis is "arbitrary" so each core runs
    # j = 0..Nt-1 in order for every row tile it owns (safe on v7x megacore).
    @pl.when(pl.program_id(1) == 0)
    def _():
        x = x_ref[...].astype(jnp.float32)
        mu = jnp.mean(x, axis=-1, keepdims=True)
        var = jnp.mean(jnp.square(x - mu), axis=-1, keepdims=True)
        xn = (x - mu) * jax.lax.rsqrt(var + LN_EPS)
        xn = xn * g_ref[...].astype(jnp.float32) + b_ref[...].astype(jnp.float32)
        xn_ref[...] = xn.astype(xn_ref.dtype)

    # bf16 MXU matmul, f32 accumulation.
    y = jnp.dot(xn_ref[...], w_ref[...], preferred_element_type=jnp.float32)
    y = y + bias_ref[...].astype(jnp.float32)
    if act == "quick_gelu":
        y = y * jax.nn.sigmoid(1.702 * y)
    o_ref[...] = y.astype(o_ref.dtype)


def ln_matmul(x, gamma, beta, w, bias, act=None, out_dtype=None):
    M, K = x.shape
    N = w.shape[1]
    out_dtype = out_dtype or ACT_DTYPE
    tm = _row_tile(M)
    tn = _col_tile(N)
    return pl.pallas_call(
        functools.partial(_ln_matmul_kernel, act=act),
        out_shape=jax.ShapeDtypeStruct((M, N), out_dtype),
        grid=(M // tm, N // tn),
        in_specs=[
            pl.BlockSpec((tm, K), lambda i, j: (i, 0)),
            pl.BlockSpec((1, K), lambda i, j: (0, 0)),
            pl.BlockSpec((1, K), lambda i, j: (0, 0)),
            pl.BlockSpec((K, tn), lambda i, j: (0, j)),
            pl.BlockSpec((1, tn), lambda i, j: (0, j)),
        ],
        out_specs=pl.BlockSpec((tm, tn), lambda i, j: (i, j)),
        scratch_shapes=[pltpu.VMEM((tm, K), jnp.bfloat16)],
        compiler_params=pltpu.CompilerParams(
            dimension_semantics=("parallel", "arbitrary"),
            vmem_limit_bytes=VMEM_LIMIT),
    )(x, gamma.reshape(1, K), beta.reshape(1, K), w, bias.reshape(1, N))


# ----------------------------------- tiled matmul + bias + residual-add epilogue
def _matmul_res_kernel(x_ref, w_ref, bias_ref, res_ref, o_ref, acc_ref):
    @pl.when(pl.program_id(2) == 0)
    def _():
        acc_ref[...] = jnp.zeros_like(acc_ref)

    acc_ref[...] += jnp.dot(x_ref[...], w_ref[...],
                            preferred_element_type=jnp.float32)

    @pl.when(pl.program_id(2) == pl.num_programs(2) - 1)
    def _():
        y = (acc_ref[...] + bias_ref[...].astype(jnp.float32)
             + res_ref[...].astype(jnp.float32))
        o_ref[...] = y.astype(o_ref.dtype)


def matmul_bias_residual(x, w, bias, res, out_dtype=None):
    M, K = x.shape
    N = w.shape[1]
    out_dtype = out_dtype or ACT_DTYPE
    tm = _row_tile(M)
    tn = _col_tile(N)
    tk = _tile(K, 2048, 128)
    return pl.pallas_call(
        _matmul_res_kernel,
        out_shape=jax.ShapeDtypeStruct((M, N), out_dtype),
        grid=(M // tm, N // tn, K // tk),
        in_specs=[
            pl.BlockSpec((tm, tk), lambda i, j, k: (i, k)),
            pl.BlockSpec((tk, tn), lambda i, j, k: (k, j)),
            pl.BlockSpec((1, tn), lambda i, j, k: (0, j)),
            pl.BlockSpec((tm, tn), lambda i, j, k: (i, j)),
        ],
        out_specs=pl.BlockSpec((tm, tn), lambda i, j, k: (i, j)),
        scratch_shapes=[pltpu.VMEM((tm, tn), jnp.float32)],
        compiler_params=pltpu.CompilerParams(
            dimension_semantics=("parallel", "parallel", "arbitrary"),
            vmem_limit_bytes=VMEM_LIMIT),
    )(x, w, bias.reshape(1, N), res)


# ------------------------------------------------------ causal multi-head attention
def _attn_kernel(qkv_ref, o_ref, *, Bt, S, H, Dh, scale):
    # qkv_ref: (Bt*S, 3*D) fused [q | k | v] columns for Bt sequences.
    D = H * Dh
    row = jax.lax.broadcasted_iota(jnp.int32, (S, S), 0)
    col = jax.lax.broadcasted_iota(jnp.int32, (S, S), 1)
    causal = col <= row
    neg = float(jnp.finfo(jnp.float32).min)

    def head_out(r0, h):
        q = qkv_ref[pl.ds(r0, S), pl.ds(h * Dh, Dh)]
        k = qkv_ref[pl.ds(r0, S), pl.ds(D + h * Dh, Dh)]
        v = qkv_ref[pl.ds(r0, S), pl.ds(2 * D + h * Dh, Dh)]
        # Fold 1/sqrt(Dh) into q (S x Dh) instead of scaling the S x S scores.
        qs = (q.astype(jnp.float32) * scale).astype(jnp.bfloat16)
        s = jax.lax.dot_general(qs, k, (((1,), (1,)), ((), ())),
                                preferred_element_type=jnp.float32)
        s = jnp.where(causal, s, neg)
        s = s - jnp.max(s, axis=-1, keepdims=True)
        p = jnp.exp(s)
        p = p * pl.reciprocal(jnp.sum(p, axis=-1, keepdims=True), approx=True)
        return jnp.dot(p.astype(v.dtype), v, preferred_element_type=jnp.float32)

    for b in range(Bt):                       # static loops, unrolled
        r0 = b * S
        h = 0
        while h < H:
            if h + 1 < H:
                # Two heads at a time: 2*Dh-lane (128 for Dh=64) store as soon as
                # computed; only two heads' outputs live at once (no big concat).
                pair = jnp.concatenate([head_out(r0, h), head_out(r0, h + 1)],
                                       axis=-1)
                o_ref[pl.ds(r0, S), pl.ds(h * Dh, 2 * Dh)] = pair.astype(o_ref.dtype)
                h += 2
            else:
                o_ref[pl.ds(r0, S), pl.ds(h * Dh, Dh)] = (
                    head_out(r0, h).astype(o_ref.dtype))
                h += 1


def _pick_bt(B, target=8):
    # Several sequences per grid step (amortize per-step overhead), but keep
    # >=2 grid steps where possible so v7x's 2 TensorCores both get work.
    bt = min(B, target)
    while bt > 1 and (B % bt != 0 or B // bt < 2):
        bt -= 1
    return max(bt, 1)


def causal_attention(qkv, B, S, D, H):
    Dh = D // H
    scale = float(Dh) ** -0.5
    Bt = _pick_bt(B)
    return pl.pallas_call(
        functools.partial(_attn_kernel, Bt=Bt, S=S, H=H, Dh=Dh, scale=scale),
        out_shape=jax.ShapeDtypeStruct((B * S, D), ACT_DTYPE),
        grid=(B // Bt,),
        in_specs=[pl.BlockSpec((Bt * S, 3 * D), lambda b: (b, 0))],
        out_specs=pl.BlockSpec((Bt * S, D), lambda b: (b, 0)),
        compiler_params=pltpu.CompilerParams(
            dimension_semantics=("parallel",), vmem_limit_bytes=VMEM_LIMIT),
    )(qkv)


# ------------------------------------------------------------------ model assembly
def encoder_layer(x, p, B, S, D, H):
    # x: [B*S, D] bf16 activations (also the residual stream)
    qkv = ln_matmul(x, p["ln1_g"], p["ln1_b"], p["qkv_w"], p["qkv_b"])       # [M, 3D]
    attn = causal_attention(qkv, B, S, D, H)                                 # [M, D]
    x = matmul_bias_residual(attn, p["o_w"], p["o_b"], res=x)                # +residual
    h = ln_matmul(x, p["ln2_g"], p["ln2_b"], p["fc1_w"], p["fc1_b"],
                  act="quick_gelu")                                          # [M, I]
    x = matmul_bias_residual(h, p["fc2_w"], p["fc2_b"], res=x)               # +residual
    return x


def clip_text_encoder(input_ids, params, config):
    B, S = input_ids.shape
    D, H = config["hidden"], config["heads"]
    # embedding lookups are glue (gather) in plain JAX; tables stored bf16
    tok = jnp.take(params["token_emb"], input_ids, axis=0)                   # [B, S, D]
    pos = params["pos_emb"][:S]                                              # [S, D]
    x = (tok + pos[None, :, :]).astype(ACT_DTYPE).reshape(B * S, D)
    for lp in params["layers"]:
        x = encoder_layer(x, lp, B, S, D, H)
    x = layer_norm(x, params["lnf_g"], params["lnf_b"], out_dtype=jnp.float32)
    return x.reshape(B, S, D)                                                # last_hidden_state


# ----------------------------------------------------------------- params (synthetic)
def init_params(key, config):
    D = config["hidden"]
    I = config["intermediate"]
    V = config["vocab"]
    P = config["max_pos"]
    L = config["layers"]

    keys = iter(jax.random.split(key, 2 + 4 * L))

    def nrm(k, shape, dtype=jnp.float32):
        return (jax.random.normal(k, shape, jnp.float32) * 0.02).astype(dtype)

    W = jnp.bfloat16  # matmul weights + embedding tables stored bf16
    params = {
        "token_emb": nrm(next(keys), (V, D), W),
        "pos_emb": nrm(next(keys), (P, D), W),
        "lnf_g": jnp.ones((D,), jnp.float32),
        "lnf_b": jnp.zeros((D,), jnp.float32),
        "layers": [],
    }
    for _ in range(L):
        lp = {
            "ln1_g": jnp.ones((D,), jnp.float32),
            "ln1_b": jnp.zeros((D,), jnp.float32),
            "ln2_g": jnp.ones((D,), jnp.float32),
            "ln2_b": jnp.zeros((D,), jnp.float32),
            # fused [q | k | v] projection
            "qkv_w": nrm(next(keys), (D, 3 * D), W),
            "qkv_b": jnp.zeros((3 * D,), jnp.float32),
            "o_w": nrm(next(keys), (D, D), W),
            "o_b": jnp.zeros((D,), jnp.float32),
            "fc1_w": nrm(next(keys), (D, I), W),
            "fc1_b": jnp.zeros((I,), jnp.float32),
            "fc2_w": nrm(next(keys), (I, D), W),
            "fc2_b": jnp.zeros((D,), jnp.float32),
        }
        params["layers"].append(lp)
    return params


if __name__ == "__main__":
    config = {
        "vocab": 64,
        "max_pos": 16,
        "hidden": 32,
        "heads": 4,
        "intermediate": 128,
        "layers": 2,
    }
    B, S = 2, 8

    key = jax.random.PRNGKey(0)
    k_param, k_ids = jax.random.split(key)
    params = init_params(k_param, config)
    input_ids = jax.random.randint(k_ids, (B, S), 0, config["vocab"], jnp.int32)

    fwd = jax.jit(lambda ids, ps: clip_text_encoder(ids, ps, config))
    out = jax.block_until_ready(fwd(input_ids, params))
    assert out.shape == (B, S, config["hidden"])
    assert out.dtype == jnp.float32
    print("KERNEL_OK")
</pallas_src>

<mosaic_0001>
module attributes {stable_mosaic.version = 11 : i64} {
  func.func @_attn_kernel(%arg0: i32, %arg1: memref<8x96xbf16, #tpu.memory_space<vmem>>, %arg2: memref<8x32xbf16, #tpu.memory_space<vmem>>) attributes {dimension_semantics = [#tpu.dimension_semantics<parallel>], iteration_bounds = array<i64: 2>, scalar_prefetch = 0 : i64, scratch_operands = 0 : i64, tpu.core_type = #tpu.core_type<tc>, window_params = [{transform_indices = @transform_0, window_bounds = array<i64: 8, 96>}, {transform_indices = @transform_1, window_bounds = array<i64: 8, 32>}]} {
    %0 = tpu.iota {dimensions = array<i32: 0>} : vector<8x8xi32>
    %1 = tpu.iota {dimensions = array<i32: 1>} : vector<8x8xi32>
    %2 = arith.cmpi sle, %1, %0 : vector<8x8xi32>
    %c0 = arith.constant 0 : index
    %c0_0 = arith.constant 0 : index
    %3 = vector.load %arg1[%c0, %c0_0] : memref<8x96xbf16, #tpu.memory_space<vmem>>, vector<8x8xbf16>
    %c0_1 = arith.constant 0 : index
    %c32 = arith.constant 32 : index
    %4 = vector.load %arg1[%c0_1, %c32] : memref<8x96xbf16, #tpu.memory_space<vmem>>, vector<8x8xbf16>
    %c0_2 = arith.constant 0 : index
    %c64 = arith.constant 64 : index
    %5 = vector.load %arg1[%c0_2, %c64] : memref<8x96xbf16, #tpu.memory_space<vmem>>, vector<8x8xbf16>
    %6 = arith.extf %3 : vector<8x8xbf16> to vector<8x8xf32>
    %cst = arith.constant 0.353553385 : f32
    %7 = vector.broadcast %cst : f32 to vector<8x8xf32>
    %8 = arith.mulf %6, %7 : vector<8x8xf32>
    %9 = arith.truncf %8 : vector<8x8xf32> to vector<8x8xbf16>
    %cst_3 = arith.constant dense<0.000000e+00> : vector<8x8xf32>
    %10 = tpu.matmul %9, %4, %cst_3 {dimension_numbers = #tpu.dot_dimension_numbers<[1], [1], [0], [0], [0, 0, 1, 0], [], []>} : vector<8x8xbf16>, vector<8x8xbf16>, vector<8x8xf32> -> vector<8x8xf32>
    %cst_4 = arith.constant -3.40282347E+38 : f32
    %11 = vector.broadcast %cst_4 : f32 to vector<8x8xf32>
    %12 = arith.select %2, %10, %11 : vector<8x8xi1>, vector<8x8xf32>
    %cst_5 = arith.constant dense<0xFF800000> : vector<8xf32>
    %13 = vector.multi_reduction <maximumf>, %12, %cst_5 [1] : vector<8x8xf32> to vector<8xf32>
    %14 = vector.shape_cast %13 : vector<8xf32> to vector<8x1xf32>
    %15 = vector.broadcast %14 : vector<8x1xf32> to vector<8x8xf32>
    %16 = arith.subf %12, %15 : vector<8x8xf32>
    %17 = math.exp %16 : vector<8x8xf32>
    %cst_6 = arith.constant dense<0.000000e+00> : vector<8xf32>
    %18 = vector.multi_reduction <add>, %17, %cst_6 [1] : vector<8x8xf32> to vector<8xf32>
    %19 = vector.shape_cast %18 : vector<8xf32> to vector<8x1xf32>
    %20 = tpu.reciprocal %19 {approx = true} : vector<8x1xf32> -> vector<8x1xf32>
    %21 = vector.broadcast %20 : vector<8x1xf32> to vector<8x8xf32>
    %22 = arith.mulf %17, %21 : vector<8x8xf32>
    %23 = arith.truncf %22 : vector<8x8xf32> to vector<8x8xbf16>
    %cst_7 = arith.constant dense<0.000000e+00> : vector<8x8xf32>
    %24 = tpu.matmul %23, %5, %cst_7 {dimension_numbers = #tpu.dot_dimension_numbers<[1], [0], [0], [1], [0, 0, 1, 1], [], []>} : vector<8x8xbf16>, vector<8x8xbf16>, vector<8x8xf32> -> vector<8x8xf32>
    %c0_8 = arith.constant 0 : index
    %c8 = arith.constant 8 : index
    %25 = vector.load %arg1[%c0_8, %c8] : memref<8x96xbf16, #tpu.memory_space<vmem>>, vector<8x8xbf16>
    %c0_9 = arith.constant 0 : index
    %c40 = arith.constant 40 : index
    %26 = vector.load %arg1[%c0_9, %c40] : memref<8x96xbf16, #tpu.memory_space<vmem>>, vector<8x8xbf16>
    %c0_10 = arith.constant 0 : index
    %c72 = arith.constant 72 : index
    %27 = vector.load %arg1[%c0_10, %c72] : memref<8x96xbf16, #tpu.memory_space<vmem>>, vector<8x8xbf16>
    %28 = arith.extf %25 : vector<8x8xbf16> to vector<8x8xf32>
    %cst_11 = arith.constant 0.353553385 : f32
    %29 = vector.broadcast %cst_11 : f32 to vector<8x8xf32>
    %30 = arith.mulf %28, %29 : vector<8x8xf32>
    %31 = arith.truncf %30 : vector<8x8xf32> to vector<8x8xbf16>
    %cst_12 = arith.constant dense<0.000000e+00> : vector<8x8xf32>
    %32 = tpu.matmul %31, %26, %cst_12 {dimension_numbers = #tpu.dot_dimension_numbers<[1], [1], [0], [0], [0, 0, 1, 0], [], []>} : vector<8x8xbf16>, vector<8x8xbf16>, vector<8x8xf32> -> vector<8x8xf32>
    %cst_13 = arith.constant -3.40282347E+38 : f32
    %33 = vector.broadcast %cst_13 : f32 to vector<8x8xf32>
    %34 = arith.select %2, %32, %33 : vector<8x8xi1>, vector<8x8xf32>
    %cst_14 = arith.constant dense<0xFF800000> : vector<8xf32>
    %35 = vector.multi_reduction <maximumf>, %34, %cst_14 [1] : vector<8x8xf32> to vector<8xf32>
    %36 = vector.shape_cast %35 : vector<8xf32> to vector<8x1xf32>
    %37 = vector.broadcast %36 : vector<8x1xf32> to vector<8x8xf32>
    %38 = arith.subf %34, %37 : vector<8x8xf32>
    %39 = math.exp %38 : vector<8x8xf32>
    %cst_15 = arith.constant dense<0.000000e+00> : vector<8xf32>
    %40 = vector.multi_reduction <add>, %39, %cst_15 [1] : vector<8x8xf32> to vector<8xf32>
    %41 = vector.shape_cast %40 : vector<8xf32> to vector<8x1xf32>
    %42 = tpu.reciprocal %41 {approx = true} : vector<8x1xf32> -> vector<8x1xf32>
    %43 = vector.broadcast %42 : vector<8x1xf32> to vector<8x8xf32>
    %44 = arith.mulf %39, %43 : vector<8x8xf32>
    %45 = arith.truncf %44 : vector<8x8xf32> to vector<8x8xbf16>
    %cst_16 = arith.constant dense<0.000000e+00> : vector<8x8xf32>
    %46 = tpu.matmul %45, %27, %cst_16 {dimension_numbers = #tpu.dot_dimension_numbers<[1], [0], [0], [1], [0, 0, 1, 1], [], []>} : vector<8x8xbf16>, vector<8x8xbf16>, vector<8x8xf32> -> vector<8x8xf32>
    %47 = tpu.concatenate %24, %46 in 1 : vector<8x8xf32>, vector<8x8xf32> -> vector<8x16xf32>
    %48 = arith.truncf %47 : vector<8x16xf32> to vector<8x16xbf16>
    %c0_17 = arith.constant 0 : index
    %c0_18 = arith.constant 0 : index
    %49 = vector.load %arg2[%c0_17, %c0_18] : memref<8x32xbf16, #tpu.memory_space<vmem>>, vector<8x16xbf16>
    tpu.vector_store %arg2[%c0_17, %c0_18], %48 {strides = array<i32>} : memref<8x32xbf16, #tpu.memory_space<vmem>>, vector<8x16xbf16>,
    %c0_19 = arith.constant 0 : index
    %c16 = arith.constant 16 : index
    %50 = vector.load %arg1[%c0_19, %c16] : memref<8x96xbf16, #tpu.memory_space<vmem>>, vector<8x8xbf16>
    %c0_20 = arith.constant 0 : index
    %c48 = arith.constant 48 : index
    %51 = vector.load %arg1[%c0_20, %c48] : memref<8x96xbf16, #tpu.memory_space<vmem>>, vector<8x8xbf16>
    %c0_21 = arith.constant 0 : index
    %c80 = arith.constant 80 : index
    %52 = vector.load %arg1[%c0_21, %c80] : memref<8x96xbf16, #tpu.memory_space<vmem>>, vector<8x8xbf16>
    %53 = arith.extf %50 : vector<8x8xbf16> to vector<8x8xf32>
    %cst_22 = arith.constant 0.353553385 : f32
    %54 = vector.broadcast %cst_22 : f32 to vector<8x8xf32>
    %55 = arith.mulf %53, %54 : vector<8x8xf32>
    %56 = arith.truncf %55 : vector<8x8xf32> to vector<8x8xbf16>
    %cst_23 = arith.constant dense<0.000000e+00> : vector<8x8xf32>
    %57 = tpu.matmul %56, %51, %cst_23 {dimension_numbers = #tpu.dot_dimension_numbers<[1], [1], [0], [0], [0, 0, 1, 0], [], []>} : vector<8x8xbf16>, vector<8x8xbf16>, vector<8x8xf32> -> vector<8x8xf32>
    %cst_24 = arith.constant -3.40282347E+38 : f32
    %58 = vector.broadcast %cst_24 : f32 to vector<8x8xf32>
    %59 = arith.select %2, %57, %58 : vector<8x8xi1>, vector<8x8xf32>
    %cst_25 = arith.constant dense<0xFF800000> : vector<8xf32>
    %60 = vector.multi_reduction <maximumf>, %59, %cst_25 [1] : vector<8x8xf32> to vector<8xf32>
    %61 = vector.shape_cast %60 : vector<8xf32> to vector<8x1xf32>
    %62 = vector.broadcast %61 : vector<8x1xf32> to vector<8x8xf32>
    %63 = arith.subf %59, %62 : vector<8x8xf32>
    %64 = math.exp %63 : vector<8x8xf32>
    %cst_26 = arith.constant dense<0.000000e+00> : vector<8xf32>
    %65 = vector.multi_reduction <add>, %64, %cst_26 [1] : vector<8x8xf32> to vector<8xf32>
    %66 = vector.shape_cast %65 : vector<8xf32> to vector<8x1xf32>
    %67 = tpu.reciprocal %66 {approx = true} : vector<8x1xf32> -> vector<8x1xf32>
    %68 = vector.broadcast %67 : vector<8x1xf32> to vector<8x8xf32>
    %69 = arith.mulf %64, %68 : vector<8x8xf32>
    %70 = arith.truncf %69 : vector<8x8xf32> to vector<8x8xbf16>
    %cst_27 = arith.constant dense<0.000000e+00> : vector<8x8xf32>
    %71 = tpu.matmul %70, %52, %cst_27 {dimension_numbers = #tpu.dot_dimension_numbers<[1], [0], [0], [1], [0, 0, 1, 1], [], []>} : vector<8x8xbf16>, vector<8x8xbf16>, vector<8x8xf32> -> vector<8x8xf32>
    %c0_28 = arith.constant 0 : index
    %c24 = arith.constant 24 : index
    %72 = vector.load %arg1[%c0_28, %c24] : memref<8x96xbf16, #tpu.memory_space<vmem>>, vector<8x8xbf16>
    %c0_29 = arith.constant 0 : index
    %c56 = arith.constant 56 : index
    %73 = vector.load %arg1[%c0_29, %c56] : memref<8x96xbf16, #tpu.memory_space<vmem>>, vector<8x8xbf16>
    %c0_30 = arith.constant 0 : index
    %c88 = arith.constant 88 : index
    %74 = vector.load %arg1[%c0_30, %c88] : memref<8x96xbf16, #tpu.memory_space<vmem>>, vector<8x8xbf16>
    %75 = arith.extf %72 : vector<8x8xbf16> to vector<8x8xf32>
    %cst_31 = arith.constant 0.353553385 : f32
    %76 = vector.broadcast %cst_31 : f32 to vector<8x8xf32>
    %77 = arith.mulf %75, %76 : vector<8x8xf32>
    %78 = arith.truncf %77 : vector<8x8xf32> to vector<8x8xbf16>
    %cst_32 = arith.constant dense<0.000000e+00> : vector<8x8xf32>
    %79 = tpu.matmul %78, %73, %cst_32 {dimension_numbers = #tpu.dot_dimension_numbers<[1], [1], [0], [0], [0, 0, 1, 0], [], []>} : vector<8x8xbf16>, vector<8x8xbf16>, vector<8x8xf32> -> vector<8x8xf32>
    %cst_33 = arith.constant -3.40282347E+38 : f32
    %80 = vector.broadcast %cst_33 : f32 to vector<8x8xf32>
    %81 = arith.select %2, %79, %80 : vector<8x8xi1>, vector<8x8xf32>
    %cst_34 = arith.constant dense<0xFF800000> : vector<8xf32>
    %82 = vector.multi_reduction <maximumf>, %81, %cst_34 [1] : vector<8x8xf32> to vector<8xf32>
    %83 = vector.shape_cast %82 : vector<8xf32> to vector<8x1xf32>
    %84 = vector.broadcast %83 : vector<8x1xf32> to vector<8x8xf32>
    %85 = arith.subf %81, %84 : vector<8x8xf32>
    %86 = math.exp %85 : vector<8x8xf32>
    %cst_35 = arith.constant dense<0.000000e+00> : vector<8xf32>
    %87 = vector.multi_reduction <add>, %86, %cst_35 [1] : vector<8x8xf32> to vector<8xf32>
    %88 = vector.shape_cast %87 : vector<8xf32> to vector<8x1xf32>
    %89 = tpu.reciprocal %88 {approx = true} : vector<8x1xf32> -> vector<8x1xf32>
    %90 = vector.broadcast %89 : vector<8x1xf32> to vector<8x8xf32>
    %91 = arith.mulf %86, %90 : vector<8x8xf32>
    %92 = arith.truncf %91 : vector<8x8xf32> to vector<8x8xbf16>
    %cst_36 = arith.constant dense<0.000000e+00> : vector<8x8xf32>
    %93 = tpu.matmul %92, %74, %cst_36 {dimension_numbers = #tpu.dot_dimension_numbers<[1], [0], [0], [1], [0, 0, 1, 1], [], []>} : vector<8x8xbf16>, vector<8x8xbf16>, vector<8x8xf32> -> vector<8x8xf32>
    %94 = tpu.concatenate %71, %93 in 1 : vector<8x8xf32>, vector<8x8xf32> -> vector<8x16xf32>
    %95 = arith.truncf %94 : vector<8x16xf32> to vector<8x16xbf16>
    %c0_37 = arith.constant 0 : index
    %c16_38 = arith.constant 16 : index
    %96 = vector.load %arg2[%c0_37, %c16_38] : memref<8x32xbf16, #tpu.memory_space<vmem>>, vector<8x16xbf16>
    tpu.vector_store %arg2[%c0_37, %c16_38], %95 {strides = array<i32>} : memref<8x32xbf16, #tpu.memory_space<vmem>>, vector<8x16xbf16>,
    return
  }
  func.func @transform_0(%arg0: i32) -> (i32, i32) {
    %c0_i32 = arith.constant 0 : i32
    %c0_i32_0 = arith.constant 0 : i32
    return %arg0, %c0_i32 : i32, i32
  }
  func.func @transform_1(%arg0: i32) -> (i32, i32) {
    %c0_i32 = arith.constant 0 : i32
    %c0_i32_0 = arith.constant 0 : i32
    return %arg0, %c0_i32 : i32, i32
  }
}

module attributes {stable_mosaic.version = 11 : i64} {
  func.func @_ln_matmul_kernel(%arg0: i32, %arg1: i32, %arg2: memref<8x32xbf16, #tpu.memory_space<vmem>>, %arg3: memref<1x32xf32, #tpu.memory_space<vmem>>, %arg4: memref<1x32xf32, #tpu.memory_space<vmem>>, %arg5: memref<32x96xbf16, #tpu.memory_space<vmem>>, %arg6: memref<1x96xf32, #tpu.memory_space<vmem>>, %arg7: memref<8x96xbf16, #tpu.memory_space<vmem>>, %arg8: memref<8x32xbf16, #tpu.memory_space<vmem>>) attributes {dimension_semantics = [#tpu.dimension_semantics<parallel>, #tpu.dimension_semantics<arbitrary>], iteration_bounds = array<i64: 2, 1>, scalar_prefetch = 0 : i64, scratch_operands = 1 : i64, tpu.core_type = #tpu.core_type<tc>, window_params = [{transform_indices = @transform_0, window_bounds = array<i64: 8, 32>}, {pipeline_mode = #tpu.pipeline_mode<synchronous>, transform_indices = @transform_1, window_bounds = array<i64: 1, 32>}, {pipeline_mode = #tpu.pipeline_mode<synchronous>, transform_indices = @transform_2, window_bounds = array<i64: 1, 32>}, {transform_indices = @transform_3, window_bounds = array<i64: 32, 96>}, {transform_indices = @transform_4, window_bounds = array<i64: 1, 96>}, {transform_indices = @transform_5, window_bounds = array<i64: 8, 96>}]} {
    %c0_i32 = arith.constant 0 : i32
    %0 = arith.cmpi eq, %arg1, %c0_i32 : i32
    %1 = arith.extui %0 : i1 to i32
    %c0_i32_0 = arith.constant 0 : i32
    %2 = arith.cmpi ne, %1, %c0_i32_0 : i32
    scf.if %2 {
      %c0_8 = arith.constant 0 : index
      %c0_9 = arith.constant 0 : index
      %11 = vector.load %arg2[%c0_8, %c0_9] : memref<8x32xbf16, #tpu.memory_space<vmem>>, vector<8x32xbf16>
      %12 = arith.extf %11 : vector<8x32xbf16> to vector<8x32xf32>
      %cst_10 = arith.constant dense<0.000000e+00> : vector<8xf32>
      %13 = vector.multi_reduction <add>, %12, %cst_10 [1] : vector<8x32xf32> to vector<8xf32>
      %14 = vector.shape_cast %13 : vector<8xf32> to vector<8x1xf32>
      %cst_11 = arith.constant 3.200000e+01 : f32
      %15 = vector.broadcast %cst_11 : f32 to vector<8x1xf32>
      %16 = arith.divf %14, %15 : vector<8x1xf32>
      %17 = vector.broadcast %16 : vector<8x1xf32> to vector<8x32xf32>
      %18 = arith.subf %12, %17 : vector<8x32xf32>
      %19 = arith.mulf %18, %18 : vector<8x32xf32>
      %cst_12 = arith.constant dense<0.000000e+00> : vector<8xf32>
      %20 = vector.multi_reduction <add>, %19, %cst_12 [1] : vector<8x32xf32> to vector<8xf32>
      %21 = vector.shape_cast %20 : vector<8xf32> to vector<8x1xf32>
      %cst_13 = arith.constant 3.200000e+01 : f32
      %22 = vector.broadcast %cst_13 : f32 to vector<8x1xf32>
      %23 = arith.divf %21, %22 : vector<8x1xf32>
      %24 = vector.broadcast %16 : vector<8x1xf32> to vector<8x32xf32>
      %25 = arith.subf %12, %24 : vector<8x32xf32>
      %cst_14 = arith.constant 9.99999974E-6 : f32
      %26 = vector.broadcast %cst_14 : f32 to vector<8x1xf32>
      %27 = arith.addf %23, %26 : vector<8x1xf32>
      %28 = math.rsqrt %27 : vector<8x1xf32>
      %29 = vector.broadcast %28 : vector<8x1xf32> to vector<8x32xf32>
      %30 = arith.mulf %25, %29 : vector<8x32xf32>
      %c0_15 = arith.constant 0 : index
      %c0_16 = arith.constant 0 : index
      %31 = vector.load %arg3[%c0_15, %c0_16] : memref<1x32xf32, #tpu.memory_space<vmem>>, vector<1x32xf32>
      %32 = vector.broadcast %31 : vector<1x32xf32> to vector<8x32xf32>
      %33 = arith.mulf %30, %32 : vector<8x32xf32>
      %c0_17 = arith.constant 0 : index
      %c0_18 = arith.constant 0 : index
      %34 = vector.load %arg4[%c0_17, %c0_18] : memref<1x32xf32, #tpu.memory_space<vmem>>, vector<1x32xf32>
      %35 = vector.broadcast %34 : vector<1x32xf32> to vector<8x32xf32>
      %36 = arith.addf %33, %35 : vector<8x32xf32>
      %37 = arith.truncf %36 : vector<8x32xf32> to vector<8x32xbf16>
      %c0_19 = arith.constant 0 : index
      %c0_20 = arith.constant 0 : index
      %38 = vector.load %arg8[%c0_19, %c0_20] : memref<8x32xbf16, #tpu.memory_space<vmem>>, vector<8x32xbf16>
      tpu.vector_store %arg8[%c0_19, %c0_20], %37 {strides = array<i32>} : memref<8x32xbf16, #tpu.memory_space<vmem>>, vector<8x32xbf16>,
    } else {
    }
    %c0 = arith.constant 0 : index
    %c0_1 = arith.constant 0 : index
    %3 = vector.load %arg8[%c0, %c0_1] : memref<8x32xbf16, #tpu.memory_space<vmem>>, vector<8x32xbf16>
    %c0_2 = arith.constant 0 : index
    %c0_3 = arith.constant 0 : index
    %4 = vector.load %arg5[%c0_2, %c0_3] : memref<32x96xbf16, #tpu.memory_space<vmem>>, vector<32x96xbf16>
    %cst = arith.constant dense<0.000000e+00> : vector<8x96xf32>
    %5 = tpu.matmul %3, %4, %cst {dimension_numbers = #tpu.dot_dimension_numbers<[1], [0], [0], [1], [0, 0, 1, 1], [], []>} : vector<8x32xbf16>, vector<32x96xbf16>, vector<8x96xf32> -> vector<8x96xf32>
    %c0_4 = arith.constant 0 : index
    %c0_5 = arith.constant 0 : index
    %6 = vector.load %arg6[%c0_4, %c0_5] : memref<1x96xf32, #tpu.memory_space<vmem>>, vector<1x96xf32>
    %7 = vector.broadcast %6 : vector<1x96xf32> to vector<8x96xf32>
    %8 = arith.addf %5, %7 : vector<8x96xf32>
    %9 = arith.truncf %8 : vector<8x96xf32> to vector<8x96xbf16>
    %c0_6 = arith.constant 0 : index
    %c0_7 = arith.constant 0 : index
    %10 = vector.load %arg7[%c0_6, %c0_7] : memref<8x96xbf16, #tpu.memory_space<vmem>>, vector<8x96xbf16>
    tpu.vector_store %arg7[%c0_6, %c0_7], %9 {strides = array<i32>} : memref<8x96xbf16, #tpu.memory_space<vmem>>, vector<8x96xbf16>,
    return
  }
  func.func @transform_0(%arg0: i32, %arg1: i32) -> (i32, i32) {
    %c0_i32 = arith.constant 0 : i32
    %c0_i32_0 = arith.constant 0 : i32
    return %arg0, %c0_i32 : i32, i32
  }
  func.func @transform_1(%arg0: i32, %arg1: i32) -> (i32, i32) {
    %c0_i32 = arith.constant 0 : i32
    %c0_i32_0 = arith.constant 0 : i32
    %c0_i32_1 = arith.constant 0 : i32
    return %c0_i32, %c0_i32_0 : i32, i32
  }
  func.func @transform_2(%arg0: i32, %arg1: i32) -> (i32, i32) {
    %c0_i32 = arith.constant 0 : i32
    %c0_i32_0 = arith.constant 0 : i32
    %c0_i32_1 = arith.constant 0 : i32
    return %c0_i32, %c0_i32_0 : i32, i32
  }
  func.func @transform_3(%arg0: i32, %arg1: i32) -> (i32, i32) {
    %c0_i32 = arith.constant 0 : i32
    %c0_i32_0 = arith.constant 0 : i32
    return %c0_i32, %arg1 : i32, i32
  }
  func.func @transform_4(%arg0: i32, %arg1: i32) -> (i32, i32) {
    %c0_i32 = arith.constant 0 : i32
    %c0_i32_0 = arith.constant 0 : i32
    return %c0_i32, %arg1 : i32, i32
  }
  func.func @transform_5(%arg0: i32, %arg1: i32) -> (i32, i32) {
    %c0_i32 = arith.constant 0 : i32
    return %arg0, %arg1 : i32, i32
  }
}

module attributes {stable_mosaic.version = 11 : i64} {
  func.func @_matmul_res_kernel(%arg0: i32, %arg1: i32, %arg2: i32, %arg3: memref<8x32xbf16, #tpu.memory_space<vmem>>, %arg4: memref<32x32xbf16, #tpu.memory_space<vmem>>, %arg5: memref<1x32xf32, #tpu.memory_space<vmem>>, %arg6: memref<8x32xbf16, #tpu.memory_space<vmem>>, %arg7: memref<8x32xbf16, #tpu.memory_space<vmem>>, %arg8: memref<8x32xf32, #tpu.memory_space<vmem>>) attributes {dimension_semantics = [#tpu.dimension_semantics<parallel>, #tpu.dimension_semantics<parallel>, #tpu.dimension_semantics<arbitrary>], iteration_bounds = array<i64: 2, 1, 1>, scalar_prefetch = 0 : i64, scratch_operands = 1 : i64, tpu.core_type = #tpu.core_type<tc>, window_params = [{transform_indices = @transform_0, window_bounds = array<i64: 8, 32>}, {transform_indices = @transform_1, window_bounds = array<i64: 32, 32>}, {transform_indices = @transform_2, window_bounds = array<i64: 1, 32>}, {transform_indices = @transform_3, window_bounds = array<i64: 8, 32>}, {transform_indices = @transform_4, window_bounds = array<i64: 8, 32>}]} {
    %c0_i32 = arith.constant 0 : i32
    %0 = arith.cmpi eq, %arg2, %c0_i32 : i32
    %1 = arith.extui %0 : i1 to i32
    %c0_i32_0 = arith.constant 0 : i32
    %2 = arith.cmpi ne, %1, %c0_i32_0 : i32
    scf.if %2 {
      %cst_10 = arith.constant 0.000000e+00 : f32
      %12 = vector.broadcast %cst_10 : f32 to vector<8x32xf32>
      %c0_11 = arith.constant 0 : index
      %c0_12 = arith.constant 0 : index
      %13 = vector.load %arg8[%c0_11, %c0_12] : memref<8x32xf32, #tpu.memory_space<vmem>>, vector<8x32xf32>
      tpu.vector_store %arg8[%c0_11, %c0_12], %12 {strides = array<i32>} : memref<8x32xf32, #tpu.memory_space<vmem>>, vector<8x32xf32>,
    } else {
    }
    %c0 = arith.constant 0 : index
    %c0_1 = arith.constant 0 : index
    %3 = vector.load %arg8[%c0, %c0_1] : memref<8x32xf32, #tpu.memory_space<vmem>>, vector<8x32xf32>
    %c0_2 = arith.constant 0 : index
    %c0_3 = arith.constant 0 : index
    %4 = vector.load %arg3[%c0_2, %c0_3] : memref<8x32xbf16, #tpu.memory_space<vmem>>, vector<8x32xbf16>
    %c0_4 = arith.constant 0 : index
    %c0_5 = arith.constant 0 : index
    %5 = vector.load %arg4[%c0_4, %c0_5] : memref<32x32xbf16, #tpu.memory_space<vmem>>, vector<32x32xbf16>
    %cst = arith.constant dense<0.000000e+00> : vector<8x32xf32>
    %6 = tpu.matmul %4, %5, %cst {dimension_numbers = #tpu.dot_dimension_numbers<[1], [0], [0], [1], [0, 0, 1, 1], [], []>} : vector<8x32xbf16>, vector<32x32xbf16>, vector<8x32xf32> -> vector<8x32xf32>
    %7 = arith.addf %3, %6 : vector<8x32xf32>
    %c0_6 = arith.constant 0 : index
    %c0_7 = arith.constant 0 : index
    %8 = vector.load %arg8[%c0_6, %c0_7] : memref<8x32xf32, #tpu.memory_space<vmem>>, vector<8x32xf32>
    tpu.vector_store %arg8[%c0_6, %c0_7], %7 {strides = array<i32>} : memref<8x32xf32, #tpu.memory_space<vmem>>, vector<8x32xf32>,
    %c0_i32_8 = arith.constant 0 : i32
    %9 = arith.cmpi eq, %arg2, %c0_i32_8 : i32
    %10 = arith.extui %9 : i1 to i32
    %c0_i32_9 = arith.constant 0 : i32
    %11 = arith.cmpi ne, %10, %c0_i32_9 : i32
    scf.if %11 {
      %c0_10 = arith.constant 0 : index
      %c0_11 = arith.constant 0 : index
      %12 = vector.load %arg8[%c0_10, %c0_11] : memref<8x32xf32, #tpu.memory_space<vmem>>, vector<8x32xf32>
      %c0_12 = arith.constant 0 : index
      %c0_13 = arith.constant 0 : index
      %13 = vector.load %arg5[%c0_12, %c0_13] : memref<1x32xf32, #tpu.memory_space<vmem>>, vector<1x32xf32>
      %14 = vector.broadcast %13 : vector<1x32xf32> to vector<8x32xf32>
      %15 = arith.addf %12, %14 : vector<8x32xf32>
      %c0_14 = arith.constant 0 : index
      %c0_15 = arith.constant 0 : index
      %16 = vector.load %arg6[%c0_14, %c0_15] : memref<8x32xbf16, #tpu.memory_space<vmem>>, vector<8x32xbf16>
      %17 = arith.extf %16 : vector<8x32xbf16> to vector<8x32xf32>
      %18 = arith.addf %15, %17 : vector<8x32xf32>
      %19 = arith.truncf %18 : vector<8x32xf32> to vector<8x32xbf16>
      %c0_16 = arith.constant 0 : index
      %c0_17 = arith.constant 0 : index
      %20 = vector.load %arg7[%c0_16, %c0_17] : memref<8x32xbf16, #tpu.memory_space<vmem>>, vector<8x32xbf16>
      tpu.vector_store %arg7[%c0_16, %c0_17], %19 {strides = array<i32>} : memref<8x32xbf16, #tpu.memory_space<vmem>>, vector<8x32xbf16>,
    } else {
    }
    return
  }
  func.func @transform_0(%arg0: i32, %arg1: i32, %arg2: i32) -> (i32, i32) {
    %c0_i32 = arith.constant 0 : i32
    return %arg0, %arg2 : i32, i32
  }
  func.func @transform_1(%arg0: i32, %arg1: i32, %arg2: i32) -> (i32, i32) {
    %c0_i32 = arith.constant 0 : i32
    return %arg2, %arg1 : i32, i32
  }
  func.func @transform_2(%arg0: i32, %arg1: i32, %arg2: i32) -> (i32, i32) {
    %c0_i32 = arith.constant 0 : i32
    %c0_i32_0 = arith.constant 0 : i32
    return %c0_i32, %arg1 : i32, i32
  }
  func.func @transform_3(%arg0: i32, %arg1: i32, %arg2: i32) -> (i32, i32) {
    %c0_i32 = arith.constant 0 : i32
    return %arg0, %arg1 : i32, i32
  }
  func.func @transform_4(%arg0: i32, %arg1: i32, %arg2: i32) -> (i32, i32) {
    %c0_i32 = arith.constant 0 : i32
    return %arg0, %arg1 : i32, i32
  }
}

module attributes {stable_mosaic.version = 11 : i64} {
  func.func @_ln_matmul_kernel(%arg0: i32, %arg1: i32, %arg2: memref<8x32xbf16, #tpu.memory_space<vmem>>, %arg3: memref<1x32xf32, #tpu.memory_space<vmem>>, %arg4: memref<1x32xf32, #tpu.memory_space<vmem>>, %arg5: memref<32x128xbf16, #tpu.memory_space<vmem>>, %arg6: memref<1x128xf32, #tpu.memory_space<vmem>>, %arg7: memref<8x128xbf16, #tpu.memory_space<vmem>>, %arg8: memref<8x32xbf16, #tpu.memory_space<vmem>>) attributes {dimension_semantics = [#tpu.dimension_semantics<parallel>, #tpu.dimension_semantics<arbitrary>], iteration_bounds = array<i64: 2, 1>, scalar_prefetch = 0 : i64, scratch_operands = 1 : i64, tpu.core_type = #tpu.core_type<tc>, window_params = [{transform_indices = @transform_0, window_bounds = array<i64: 8, 32>}, {pipeline_mode = #tpu.pipeline_mode<synchronous>, transform_indices = @transform_1, window_bounds = array<i64: 1, 32>}, {pipeline_mode = #tpu.pipeline_mode<synchronous>, transform_indices = @transform_2, window_bounds = array<i64: 1, 32>}, {transform_indices = @transform_3, window_bounds = array<i64: 32, 128>}, {transform_indices = @transform_4, window_bounds = array<i64: 1, 128>}, {transform_indices = @transform_5, window_bounds = array<i64: 8, 128>}]} {
    %c0_i32 = arith.constant 0 : i32
    %0 = arith.cmpi eq, %arg1, %c0_i32 : i32
    %1 = arith.extui %0 : i1 to i32
    %c0_i32_0 = arith.constant 0 : i32
    %2 = arith.cmpi ne, %1, %c0_i32_0 : i32
    scf.if %2 {
      %c0_10 = arith.constant 0 : index
      %c0_11 = arith.constant 0 : index
      %19 = vector.load %arg2[%c0_10, %c0_11] : memref<8x32xbf16, #tpu.memory_space<vmem>>, vector<8x32xbf16>
      %20 = arith.extf %19 : vector<8x32xbf16> to vector<8x32xf32>
      %cst_12 = arith.constant dense<0.000000e+00> : vector<8xf32>
      %21 = vector.multi_reduction <add>, %20, %cst_12 [1] : vector<8x32xf32> to vector<8xf32>
      %22 = vector.shape_cast %21 : vector<8xf32> to vector<8x1xf32>
      %cst_13 = arith.constant 3.200000e+01 : f32
      %23 = vector.broadcast %cst_13 : f32 to vector<8x1xf32>
      %24 = arith.divf %22, %23 : vector<8x1xf32>
      %25 = vector.broadcast %24 : vector<8x1xf32> to vector<8x32xf32>
      %26 = arith.subf %20, %25 : vector<8x32xf32>
      %27 = arith.mulf %26, %26 : vector<8x32xf32>
      %cst_14 = arith.constant dense<0.000000e+00> : vector<8xf32>
      %28 = vector.multi_reduction <add>, %27, %cst_14 [1] : vector<8x32xf32> to vector<8xf32>
      %29 = vector.shape_cast %28 : vector<8xf32> to vector<8x1xf32>
      %cst_15 = arith.constant 3.200000e+01 : f32
      %30 = vector.broadcast %cst_15 : f32 to vector<8x1xf32>
      %31 = arith.divf %29, %30 : vector<8x1xf32>
      %32 = vector.broadcast %24 : vector<8x1xf32> to vector<8x32xf32>
      %33 = arith.subf %20, %32 : vector<8x32xf32>
      %cst_16 = arith.constant 9.99999974E-6 : f32
      %34 = vector.broadcast %cst_16 : f32 to vector<8x1xf32>
      %35 = arith.addf %31, %34 : vector<8x1xf32>
      %36 = math.rsqrt %35 : vector<8x1xf32>
      %37 = vector.broadcast %36 : vector<8x1xf32> to vector<8x32xf32>
      %38 = arith.mulf %33, %37 : vector<8x32xf32>
      %c0_17 = arith.constant 0 : index
      %c0_18 = arith.constant 0 : index
      %39 = vector.load %arg3[%c0_17, %c0_18] : memref<1x32xf32, #tpu.memory_space<vmem>>, vector<1x32xf32>
      %40 = vector.broadcast %39 : vector<1x32xf32> to vector<8x32xf32>
      %41 = arith.mulf %38, %40 : vector<8x32xf32>
      %c0_19 = arith.constant 0 : index
      %c0_20 = arith.constant 0 : index
      %42 = vector.load %arg4[%c0_19, %c0_20] : memref<1x32xf32, #tpu.memory_space<vmem>>, vector<1x32xf32>
      %43 = vector.broadcast %42 : vector<1x32xf32> to vector<8x32xf32>
      %44 = arith.addf %41, %43 : vector<8x32xf32>
      %45 = arith.truncf %44 : vector<8x32xf32> to vector<8x32xbf16>
      %c0_21 = arith.constant 0 : index
      %c0_22 = arith.constant 0 : index
      %46 = vector.load %arg8[%c0_21, %c0_22] : memref<8x32xbf16, #tpu.memory_space<vmem>>, vector<8x32xbf16>
      tpu.vector_store %arg8[%c0_21, %c0_22], %45 {strides = array<i32>} : memref<8x32xbf16, #tpu.memory_space<vmem>>, vector<8x32xbf16>,
    } else {
    }
    %c0 = arith.constant 0 : index
    %c0_1 = arith.constant 0 : index
    %3 = vector.load %arg8[%c0, %c0_1] : memref<8x32xbf16, #tpu.memory_space<vmem>>, vector<8x32xbf16>
    %c0_2 = arith.constant 0 : index
    %c0_3 = arith.constant 0 : index
    %4 = vector.load %arg5[%c0_2, %c0_3] : memref<32x128xbf16, #tpu.memory_space<vmem>>, vector<32x128xbf16>
    %cst = arith.constant dense<0.000000e+00> : vector<8x128xf32>
    %5 = tpu.matmul %3, %4, %cst {dimension_numbers = #tpu.dot_dimension_numbers<[1], [0], [0], [1], [0, 0, 1, 1], [], []>} : vector<8x32xbf16>, vector<32x128xbf16>, vector<8x128xf32> -> vector<8x128xf32>
    %c0_4 = arith.constant 0 : index
    %c0_5 = arith.constant 0 : index
    %6 = vector.load %arg6[%c0_4, %c0_5] : memref<1x128xf32, #tpu.memory_space<vmem>>, vector<1x128xf32>
    %7 = vector.broadcast %6 : vector<1x128xf32> to vector<8x128xf32>
    %8 = arith.addf %5, %7 : vector<8x128xf32>
    %cst_6 = arith.constant 1.702000e+00 : f32
    %9 = vector.broadcast %cst_6 : f32 to vector<8x128xf32>
    %10 = arith.mulf %9, %8 : vector<8x128xf32>
    %11 = arith.negf %10 : vector<8x128xf32>
    %12 = math.exp %11 : vector<8x128xf32>
    %cst_7 = arith.constant 1.000000e+00 : f32
    %13 = vector.broadcast %cst_7 : f32 to vector<8x128xf32>
    %14 = arith.addf %13, %12 : vector<8x128xf32>
    %15 = arith.divf %13, %14 : vector<8x128xf32>
    %16 = arith.mulf %8, %15 : vector<8x128xf32>
    %17 = arith.truncf %16 : vector<8x128xf32> to vector<8x128xbf16>
    %c0_8 = arith.constant 0 : index
    %c0_9 = arith.constant 0 : index
    %18 = vector.load %arg7[%c0_8, %c0_9] : memref<8x128xbf16, #tpu.memory_space<vmem>>, vector<8x128xbf16>
    tpu.vector_store %arg7[%c0_8, %c0_9], %17 {strides = array<i32>} : memref<8x128xbf16, #tpu.memory_space<vmem>>, vector<8x128xbf16>,
    return
  }
  func.func @transform_0(%arg0: i32, %arg1: i32) -> (i32, i32) {
    %c0_i32 = arith.constant 0 : i32
    %c0_i32_0 = arith.constant 0 : i32
    return %arg0, %c0_i32 : i32, i32
  }
  func.func @transform_1(%arg0: i32, %arg1: i32) -> (i32, i32) {
    %c0_i32 = arith.constant 0 : i32
    %c0_i32_0 = arith.constant 0 : i32
    %c0_i32_1 = arith.constant 0 : i32
    return %c0_i32, %c0_i32_0 : i32, i32
  }
  func.func @transform_2(%arg0: i32, %arg1: i32) -> (i32, i32) {
    %c0_i32 = arith.constant 0 : i32
    %c0_i32_0 = arith.constant 0 : i32
    %c0_i32_1 = arith.constant 0 : i32
    return %c0_i32, %c0_i32_0 : i32, i32
  }
  func.func @transform_3(%arg0: i32, %arg1: i32) -> (i32, i32) {
    %c0_i32 = arith.constant 0 : i32
    %c0_i32_0 = arith.constant 0 : i32
    return %c0_i32, %arg1 : i32, i32
  }
  func.func @transform_4(%arg0: i32, %arg1: i32) -> (i32, i32) {
    %c0_i32 = arith.constant 0 : i32
    %c0_i32_0 = arith.constant 0 : i32
    return %c0_i32, %arg1 : i32, i32
  }
  func.func @transform_5(%arg0: i32, %arg1: i32) -> (i32, i32) {
    %c0_i32 = arith.constant 0 : i32
    return %arg0, %arg1 : i32, i32
  }
}

module attributes {stable_mosaic.version = 11 : i64} {
  func.func @_ln_kernel(%arg0: i32, %arg1: memref<8x32xbf16, #tpu.memory_space<vmem>>, %arg2: memref<1x32xf32, #tpu.memory_space<vmem>>, %arg3: memref<1x32xf32, #tpu.memory_space<vmem>>, %arg4: memref<8x32xf32, #tpu.memory_space<vmem>>) attributes {dimension_semantics = [#tpu.dimension_semantics<parallel>], iteration_bounds = array<i64: 2>, scalar_prefetch = 0 : i64, scratch_operands = 0 : i64, tpu.core_type = #tpu.core_type<tc>, window_params = [{transform_indices = @transform_0, window_bounds = array<i64: 8, 32>}, {pipeline_mode = #tpu.pipeline_mode<synchronous>, transform_indices = @transform_1, window_bounds = array<i64: 1, 32>}, {pipeline_mode = #tpu.pipeline_mode<synchronous>, transform_indices = @transform_2, window_bounds = array<i64: 1, 32>}, {transform_indices = @transform_3, window_bounds = array<i64: 8, 32>}]} {
    %c0 = arith.constant 0 : index
    %c0_0 = arith.constant 0 : index
    %0 = vector.load %arg1[%c0, %c0_0] : memref<8x32xbf16, #tpu.memory_space<vmem>>, vector<8x32xbf16>
    %1 = arith.extf %0 : vector<8x32xbf16> to vector<8x32xf32>
    %cst = arith.constant dense<0.000000e+00> : vector<8xf32>
    %2 = vector.multi_reduction <add>, %1, %cst [1] : vector<8x32xf32> to vector<8xf32>
    %3 = vector.shape_cast %2 : vector<8xf32> to vector<8x1xf32>
    %cst_1 = arith.constant 3.200000e+01 : f32
    %4 = vector.broadcast %cst_1 : f32 to vector<8x1xf32>
    %5 = arith.divf %3, %4 : vector<8x1xf32>
    %6 = vector.broadcast %5 : vector<8x1xf32> to vector<8x32xf32>
    %7 = arith.subf %1, %6 : vector<8x32xf32>
    %8 = arith.mulf %7, %7 : vector<8x32xf32>
    %cst_2 = arith.constant dense<0.000000e+00> : vector<8xf32>
    %9 = vector.multi_reduction <add>, %8, %cst_2 [1] : vector<8x32xf32> to vector<8xf32>
    %10 = vector.shape_cast %9 : vector<8xf32> to vector<8x1xf32>
    %cst_3 = arith.constant 3.200000e+01 : f32
    %11 = vector.broadcast %cst_3 : f32 to vector<8x1xf32>
    %12 = arith.divf %10, %11 : vector<8x1xf32>
    %13 = vector.broadcast %5 : vector<8x1xf32> to vector<8x32xf32>
    %14 = arith.subf %1, %13 : vector<8x32xf32>
    %cst_4 = arith.constant 9.99999974E-6 : f32
    %15 = vector.broadcast %cst_4 : f32 to vector<8x1xf32>
    %16 = arith.addf %12, %15 : vector<8x1xf32>
    %17 = math.rsqrt %16 : vector<8x1xf32>
    %18 = vector.broadcast %17 : vector<8x1xf32> to vector<8x32xf32>
    %19 = arith.mulf %14, %18 : vector<8x32xf32>
    %c0_5 = arith.constant 0 : index
    %c0_6 = arith.constant 0 : index
    %20 = vector.load %arg2[%c0_5, %c0_6] : memref<1x32xf32, #tpu.memory_space<vmem>>, vector<1x32xf32>
    %21 = vector.broadcast %20 : vector<1x32xf32> to vector<8x32xf32>
    %22 = arith.mulf %19, %21 : vector<8x32xf32>
    %c0_7 = arith.constant 0 : index
    %c0_8 = arith.constant 0 : index
    %23 = vector.load %arg3[%c0_7, %c0_8] : memref<1x32xf32, #tpu.memory_space<vmem>>, vector<1x32xf32>
    %24 = vector.broadcast %23 : vector<1x32xf32> to vector<8x32xf32>
    %25 = arith.addf %22, %24 : vector<8x32xf32>
    %c0_9 = arith.constant 0 : index
    %c0_10 = arith.constant 0 : index
    %26 = vector.load %arg4[%c0_9, %c0_10] : memref<8x32xf32, #tpu.memory_space<vmem>>, vector<8x32xf32>
    tpu.vector_store %arg4[%c0_9, %c0_10], %25 {strides = array<i32>} : memref<8x32xf32, #tpu.memory_space<vmem>>, vector<8x32xf32>,
    return
  }
  func.func @transform_0(%arg0: i32) -> (i32, i32) {
    %c0_i32 = arith.constant 0 : i32
    %c0_i32_0 = arith.constant 0 : i32
    return %arg0, %c0_i32 : i32, i32
  }
  func.func @transform_1(%arg0: i32) -> (i32, i32) {
    %c0_i32 = arith.constant 0 : i32
    %c0_i32_0 = arith.constant 0 : i32
    %c0_i32_1 = arith.constant 0 : i32
    return %c0_i32, %c0_i32_0 : i32, i32
  }
  func.func @transform_2(%arg0: i32) -> (i32, i32) {
    %c0_i32 = arith.constant 0 : i32
    %c0_i32_0 = arith.constant 0 : i32
    %c0_i32_1 = arith.constant 0 : i32
    return %c0_i32, %c0_i32_0 : i32, i32
  }
  func.func @transform_3(%arg0: i32) -> (i32, i32) {
    %c0_i32 = arith.constant 0 : i32
    %c0_i32_0 = arith.constant 0 : i32
    return %arg0, %c0_i32 : i32, i32
  }
}

module attributes {stable_mosaic.version = 11 : i64} {
  func.func @_matmul_res_kernel(%arg0: i32, %arg1: i32, %arg2: i32, %arg3: memref<8x128xbf16, #tpu.memory_space<vmem>>, %arg4: memref<128x32xbf16, #tpu.memory_space<vmem>>, %arg5: memref<1x32xf32, #tpu.memory_space<vmem>>, %arg6: memref<8x32xbf16, #tpu.memory_space<vmem>>, %arg7: memref<8x32xbf16, #tpu.memory_space<vmem>>, %arg8: memref<8x32xf32, #tpu.memory_space<vmem>>) attributes {dimension_semantics = [#tpu.dimension_semantics<parallel>, #tpu.dimension_semantics<parallel>, #tpu.dimension_semantics<arbitrary>], iteration_bounds = array<i64: 2, 1, 1>, scalar_prefetch = 0 : i64, scratch_operands = 1 : i64, tpu.core_type = #tpu.core_type<tc>, window_params = [{transform_indices = @transform_0, window_bounds = array<i64: 8, 128>}, {transform_indices = @transform_1, window_bounds = array<i64: 128, 32>}, {transform_indices = @transform_2, window_bounds = array<i64: 1, 32>}, {transform_indices = @transform_3, window_bounds = array<i64: 8, 32>}, {transform_indices = @transform_4, window_bounds = array<i64: 8, 32>}]} {
    %c0_i32 = arith.constant 0 : i32
    %0 = arith.cmpi eq, %arg2, %c0_i32 : i32
    %1 = arith.extui %0 : i1 to i32
    %c0_i32_0 = arith.constant 0 : i32
    %2 = arith.cmpi ne, %1, %c0_i32_0 : i32
    scf.if %2 {
      %cst_10 = arith.constant 0.000000e+00 : f32
      %12 = vector.broadcast %cst_10 : f32 to vector<8x32xf32>
      %c0_11 = arith.constant 0 : index
      %c0_12 = arith.constant 0 : index
      %13 = vector.load %arg8[%c0_11, %c0_12] : memref<8x32xf32, #tpu.memory_space<vmem>>, vector<8x32xf32>
      tpu.vector_store %arg8[%c0_11, %c0_12], %12 {strides = array<i32>} : memref<8x32xf32, #tpu.memory_space<vmem>>, vector<8x32xf32>,
    } else {
    }
    %c0 = arith.constant 0 : index
    %c0_1 = arith.constant 0 : index
    %3 = vector.load %arg8[%c0, %c0_1] : memref<8x32xf32, #tpu.memory_space<vmem>>, vector<8x32xf32>
    %c0_2 = arith.constant 0 : index
    %c0_3 = arith.constant 0 : index
    %4 = vector.load %arg3[%c0_2, %c0_3] : memref<8x128xbf16, #tpu.memory_space<vmem>>, vector<8x128xbf16>
    %c0_4 = arith.constant 0 : index
    %c0_5 = arith.constant 0 : index
    %5 = vector.load %arg4[%c0_4, %c0_5] : memref<128x32xbf16, #tpu.memory_space<vmem>>, vector<128x32xbf16>
    %cst = arith.constant dense<0.000000e+00> : vector<8x32xf32>
    %6 = tpu.matmul %4, %5, %cst {dimension_numbers = #tpu.dot_dimension_numbers<[1], [0], [0], [1], [0, 0, 1, 1], [], []>} : vector<8x128xbf16>, vector<128x32xbf16>, vector<8x32xf32> -> vector<8x32xf32>
    %7 = arith.addf %3, %6 : vector<8x32xf32>
    %c0_6 = arith.constant 0 : index
    %c0_7 = arith.constant 0 : index
    %8 = vector.load %arg8[%c0_6, %c0_7] : memref<8x32xf32, #tpu.memory_space<vmem>>, vector<8x32xf32>
    tpu.vector_store %arg8[%c0_6, %c0_7], %7 {strides = array<i32>} : memref<8x32xf32, #tpu.memory_space<vmem>>, vector<8x32xf32>,
    %c0_i32_8 = arith.constant 0 : i32
    %9 = arith.cmpi eq, %arg2, %c0_i32_8 : i32
    %10 = arith.extui %9 : i1 to i32
    %c0_i32_9 = arith.constant 0 : i32
    %11 = arith.cmpi ne, %10, %c0_i32_9 : i32
    scf.if %11 {
      %c0_10 = arith.constant 0 : index
      %c0_11 = arith.constant 0 : index
      %12 = vector.load %arg8[%c0_10, %c0_11] : memref<8x32xf32, #tpu.memory_space<vmem>>, vector<8x32xf32>
      %c0_12 = arith.constant 0 : index
      %c0_13 = arith.constant 0 : index
      %13 = vector.load %arg5[%c0_12, %c0_13] : memref<1x32xf32, #tpu.memory_space<vmem>>, vector<1x32xf32>
      %14 = vector.broadcast %13 : vector<1x32xf32> to vector<8x32xf32>
      %15 = arith.addf %12, %14 : vector<8x32xf32>
      %c0_14 = arith.constant 0 : index
      %c0_15 = arith.constant 0 : index
      %16 = vector.load %arg6[%c0_14, %c0_15] : memref<8x32xbf16, #tpu.memory_space<vmem>>, vector<8x32xbf16>
      %17 = arith.extf %16 : vector<8x32xbf16> to vector<8x32xf32>
      %18 = arith.addf %15, %17 : vector<8x32xf32>
      %19 = arith.truncf %18 : vector<8x32xf32> to vector<8x32xbf16>
      %c0_16 = arith.constant 0 : index
      %c0_17 = arith.constant 0 : index
      %20 = vector.load %arg7[%c0_16, %c0_17] : memref<8x32xbf16, #tpu.memory_space<vmem>>, vector<8x32xbf16>
      tpu.vector_store %arg7[%c0_16, %c0_17], %19 {strides = array<i32>} : memref<8x32xbf16, #tpu.memory_space<vmem>>, vector<8x32xbf16>,
    } else {
    }
    return
  }
  func.func @transform_0(%arg0: i32, %arg1: i32, %arg2: i32) -> (i32, i32) {
    %c0_i32 = arith.constant 0 : i32
    return %arg0, %arg2 : i32, i32
  }
  func.func @transform_1(%arg0: i32, %arg1: i32, %arg2: i32) -> (i32, i32) {
    %c0_i32 = arith.constant 0 : i32
    return %arg2, %arg1 : i32, i32
  }
  func.func @transform_2(%arg0: i32, %arg1: i32, %arg2: i32) -> (i32, i32) {
    %c0_i32 = arith.constant 0 : i32
    %c0_i32_0 = arith.constant 0 : i32
    return %c0_i32, %arg1 : i32, i32
  }
  func.func @transform_3(%arg0: i32, %arg1: i32, %arg2: i32) -> (i32, i32) {
    %c0_i32 = arith.constant 0 : i32
    return %arg0, %arg1 : i32, i32
  }
  func.func @transform_4(%arg0: i32, %arg1: i32, %arg2: i32) -> (i32, i32) {
    %c0_i32 = arith.constant 0 : i32
    return %arg0, %arg1 : i32, i32
  }
}

</mosaic_0001>

<bundles_post_ra>
// kernel: _lambda_.11
= control target key start
LH: loop header
LB: loop body
LE: loop exit
PB: predicated region body
PF: predicated region fallthrough
CT: control target
= control target key end

     0   :  { %s570_s18 = smov 0   ;;  %s572_s19 = smov 0   ;;  %s628_s0 = inlined_call_operand.vmem [shape: bf16[16,32], index: 0, kind: input, shape index: {}]   ;;  %s629_s1 = inlined_call_operand.vmem [shape: f32[1,32], index: 1, kind: input, shape index: {}]   ;;  %s630_s2 = inlined_call_operand.vmem [shape: f32[1,32], index: 2, kind: input, shape index: {}]   ;;  %s631_s3 = inlined_call_operand.vmem [shape: bf16[32,96], index: 3, kind: input, shape index: {}]   ;;  %s632_s4 = inlined_call_operand.vmem [shape: f32[1,96], index: 4, kind: input, shape index: {}]   ;;  %s633_s5 = inlined_call_operand.vmem [shape: bf16[16,96], index: 5, kind: output, shape index: {}]  }
   0x1   :  { %s574_s20 = smov 0  }
   0x2 LB: > { %s27_s21 = sadd.s32 1, %s533_s19  ;;  %p467_p0 = scmp.ge.s32.totalorder %s537_s20, 1  ;;  %s537_s20 = sphi %s574_s20, %s15_s20   ;;  %s533_s19 = sphi %s572_s19, %s635_s19   ;;  %s529_s18 = sphi %s570_s18, %s634_s18  }
   0x3   : > { %p29_p1 = scmp.ge.s32.totalorder %s27_s21, 2  ;;  %p217_p2 = scmp.lt.s32.totalorder %s537_s20, 3 }
   0x5   : > { %s637_s21 = smov (%p29_p1, %s27_s21), 0  ;;  %p218_p3 = pnand %p467_p0, %p217_p2 }
   0x6   : > { %p253_p4 = scmp.lt.s32.totalorder (!%p218_p3), %s529_s18, 1 }
   0x7   : > { %221 = sbr.rel (%p218_p3) target bundleno = 430 (0x1ae), region = 40 }
   0xc   : > { %s639_s18 = smov (!%p253_p4, %s529_s18), 1  ;;  %vm278_vm0 = vcmask 261120   ;;  %v539_v3 = vmov 32.0   ;;  %v482_v15 = vld [vmem:[%s631_s3 + $0x8] sm:$0xff]  ;;  %v481_v17 = vld [vmem:[%s631_s3] sm:$0xff]  ;;  %vm319_vm5 = vcmask 257024  }
   0xd   : > { %s468_s22 = sshll.u32 %s639_s18, 2  ;;  %511 = vrcp.f32 %v539_v3  ;;  %352 = vmatpush.bf16.msra.mxu0 %v482_v15  ;;  %v508_v26 = vld [vmem:[%s629_s1] ss:$0 sm:$0xff]  ;;  %vm360_vm6 = vcmask 781312  }
   0xe   : > { %s256_s25 = scalar_lea.vmem %s628_s0, %s468_s22  ;;  %v509_v28 = vld [vmem:[%s630_s2] ss:$0 sm:$0xff]  ;;  %s270_s13 = scalar_lea.vmem %s633_s5, %s468_s22 }
   0xf   : > { %v276_v0 = vld [vmem:[%s256_s25] sm:$0xf] }
  0x10   : > { %v277_v1 = vunpack.c.l.bf16 %v276_v0  ;;  %v510_v34 = vld [vmem:[%s632_s4] ss:$0 sm:$0xff] }
  0x11   : > { %353 = vmatpush.bf16.msra.mxu0 %v481_v17 }
  0x12   : > { %v279_v2 = vsel %vm278_vm0, %v277_v1, 0.0 }
  0x13   : > { %280 = vadd.xlane.f32.xlu0 %v279_v2  ;;  %v512_v4 = vpop.eup %511 }
  0x14   : > { %v283_v5 = vmul.f32 32.0, %v512_v4  ;;  %vm287_vm1 = vweird.f32 %v512_v4 }
  0x16   : > { %v284_v6 = vsub.f32 1.0, %v283_v5 }
  0x18   : > { %v285_v7 = vmul.f32 %v512_v4, %v284_v6 }
  0x1a   : > { %v286_v8 = vadd.f32 %v512_v4, %v285_v7 }
  0x1c   : > { %v288_v9 = vsel %vm287_vm1, %v512_v4, %v286_v8 }
  0x86   : > { %v281_v10 = vpop.xlane.xlu0 %280 }
  0x87   : > { %v289_v11 = vmul.f32 %v288_v9, %v281_v10 }
  0x89   : > { %v290_v12 = vsub.f32 %v277_v1, %v289_v11 }
  0x8b   : > { %v291_v13 = vmul.f32 %v290_v12, %v290_v12 }
  0x8d   : > { %v292_v14 = vsel %vm278_vm0, %v291_v13, 0.0 }
  0x8e   : > { %293 = vadd.xlane.f32.xlu0 %v292_v14 }
 0x101   : > { %v294_v16 = vpop.xlane.xlu0 %293 }
 0x102   : > { %v295_v18 = vmul.f32 %v294_v16, %v288_v9 }
 0x104   : > { %v296_v19 = vadd.f32 1e-05, %v295_v18 }
 0x106   : > { %513 = vrsqrt.f32 %v296_v19  ;;  %vm303_vm3 = vweird.f32 %v296_v19 }
 0x10c   : > { %v514_v20 = vpop.eup %513 }
 0x10d   : > { %v298_v21 = vmul.f32 %v514_v20, %v296_v19  ;;  %vm304_vm2 = vweird.f32 %v514_v20 }
 0x10e   : > { %vm305_vm4 = vmor %vm303_vm3, %vm304_vm2 }
 0x10f   : > { %v299_v22 = vmul.f32 %v514_v20, %v298_v21 }
 0x111   : > { %v300_v23 = vmul.f32 0.5, %v299_v22 }
 0x113   : > { %v301_v24 = vsub.f32 1.5, %v300_v23 }
 0x115   : > { %v302_v25 = vmul.f32 %v514_v20, %v301_v24 }
 0x117   : > { %v306_v27 = vsel %vm305_vm4, %v514_v20, %v302_v25 }
 0x118   : > { %v307_v29 = vmul.f32 %v306_v27, %v290_v12 }
 0x11a   : > { %v312_v30 = vmul.f32 %v508_v26, %v307_v29 }
 0x11c   : > { %v317_v31 = vadd.f32 %v509_v28, %v312_v30 }
 0x11e   : > { %v318_v32 = vpack.c.bf16 %v317_v31, %v317_v31 }
 0x120   : > { %320 = vst.msk [vmem:[#allocation2] sm:$0xf] %vm319_vm5, %v318_v32 }
 0x127   : > { %v321_v33 = vld [vmem:[#allocation2] sm:$0xf] }
 0x128   : > { %478 = vmatmul.msk.bf16.vlgmr.msra.gmra.mxu0 %vm278_vm0, %v321_v33 }
 0x1a5   : > { %v355_v35 = vpop.f32.mrf.mxu0 }
 0x1a6   : > { %v356_v36 = vadd.f32 %v510_v34, %v355_v35 }
 0x1a8   : > { %v359_v37 = vpack.c.bf16 %v356_v36, %v356_v36 }
 0x1aa   : > { %361 = vst.msk [vmem:[%s270_s13] sm:$0xf] %vm360_vm6, %v359_v37 }
 0x1ad   : > { %v357_v38 = vpop.f32.mrf.mxu0 }
 0x1ae PF: > { %s15_s20 = sadd.s32 1, %s537_s20   ;;  %s634_s18 = smov %s533_s19 }
 0x1af   : > { %p12_p5 = scmp.ge.s32.totalorder %s15_s20, 4   ;;  %s635_s19 = smov %s637_s21 }
 0x1b1   :  { %14 = sbr.rel (!%p12_p5) target bundleno = 2 (0x2), region = 80 }

// kernel: _lambda_.13
= control target key start
LH: loop header
LB: loop body
LE: loop exit
PB: predicated region body
PF: predicated region fallthrough
CT: control target
= control target key end

     0   :  { %s587_s15 = smov 0   ;;  %s589_s16 = smov 0   ;;  %s632_s0 = inlined_call_operand.vmem [shape: bf16[16,32], index: 0, kind: input, shape index: {}]   ;;  %s633_s1 = inlined_call_operand.vmem [shape: bf16[32,32], index: 1, kind: input, shape index: {}]   ;;  %s634_s2 = inlined_call_operand.vmem [shape: f32[1,32], index: 2, kind: input, shape index: {}]   ;;  %s635_s3 = inlined_call_operand.vmem [shape: bf16[16,32], index: 3, kind: input, shape index: {}]   ;;  %s636_s4 = inlined_call_operand.vmem [shape: bf16[16,32], index: 4, kind: output, shape index: {}]  }
   0x1   :  { %s591_s17 = smov 0  }
   0x2 LB: > { %s33_s18 = sadd.s32 1, %s555_s16  ;;  %p494_p0 = scmp.ge.s32.totalorder %s559_s17, 1  ;;  %s559_s17 = sphi %s591_s17, %s14_s17   ;;  %s555_s16 = sphi %s589_s16, %s638_s16   ;;  %s551_s15 = sphi %s587_s15, %s637_s15  }
   0x3   : > { %p35_p1 = scmp.ge.s32.totalorder %s33_s18, 2  ;;  %p225_p2 = scmp.lt.s32.totalorder %s559_s17, 3 }
   0x5   : > { %s640_s18 = smov (%p35_p1, %s33_s18), 0  ;;  %p226_p3 = pnand %p494_p0, %p225_p2 }
   0x6   : > { %p273_p4 = scmp.lt.s32.totalorder (!%p226_p3), %s551_s15, 1 }
   0x7   : > { %229 = sbr.rel (%p226_p3) target bundleno = 163 (0xa3), region = 36 }
   0xc   : > { %v510_v0 = vld [vmem:[%s633_s1 + $0x8] sm:$0xff]  ;;  %vm311_vm0 = vcmask 261120   ;;  %v561_v1 = vmov 0.0   ;;  %v509_v2 = vld [vmem:[%s633_s1] sm:$0xff]  ;;  %s642_s15 = smov (!%p273_p4, %s551_s15), 1  ;;  %vm363_vm1 = vcmask 257024  }
   0xd   : > { %312 = vst.msk [vmem:[#allocation2] sm:$0xff] %vm311_vm0, %v561_v1  ;;  %341 = vmatpush.bf16.msra.mxu0 %v510_v0  ;;  %s495_s23 = sshll.u32 %s642_s15, 2  ;;  %v536_v8 = vld [vmem:[%s634_s2] ss:$0 sm:$0xff] }
   0xe   : > { %s279_s26 = scalar_lea.vmem %s632_s0, %s495_s23  ;;  %s298_s29 = scalar_lea.vmem %s635_s3, %s495_s23 }
   0xf   : > { %v314_v3 = vld [vmem:[%s279_s26] sm:$0xf]  ;;  %s305_s8 = scalar_lea.vmem %s636_s4, %s495_s23 }
  0x10   : > { %v359_v7 = vld [vmem:[%s298_s29] sm:$0xf] }
  0x11   : > { %342 = vmatpush.bf16.msra.mxu0 %v509_v2  ;;  %v360_v10 = vunpack.c.l.bf16 %v359_v7 }
  0x14   : > { %506 = vmatmul.msk.bf16.vlgmr.msra.gmra.mxu0 %vm311_vm0, %v314_v3  ;;  %v313_v4 = vld [vmem:[#allocation2] sm:$0xff] }
  0x91   : > { %v344_v5 = vpop.f32.mrf.mxu0 }
  0x92   : > { %v348_v6 = vadd.f32 %v344_v5, %v313_v4 }
  0x94   : > { %349 = vst.msk [vmem:[#allocation2] sm:$0xff] %vm311_vm0, %v348_v6 }
  0x99   : > { %v346_v9 = vpop.f32.mrf.mxu0 }
  0x9b   : > { %v353_v11 = vld [vmem:[#allocation2] sm:$0xff] }
  0x9c   : > { %v358_v12 = vadd.f32 %v536_v8, %v353_v11 }
  0x9e   : > { %v361_v13 = vadd.f32 %v360_v10, %v358_v12 }
  0xa0   : > { %v362_v14 = vpack.c.bf16 %v361_v13, %v361_v13 }
  0xa2   : > { %364 = vst.msk [vmem:[%s305_s8] sm:$0xf] %vm363_vm1, %v362_v14 }
  0xa3 PF: > { %s14_s17 = sadd.s32 1, %s559_s17   ;;  %s637_s15 = smov %s555_s16 }
  0xa4   : > { %p11_p5 = scmp.ge.s32.totalorder %s14_s17, 4   ;;  %s638_s16 = smov %s640_s18 }
  0xa6   :  { %13 = sbr.rel (!%p11_p5) target bundleno = 2 (0x2), region = 83 }

// kernel: _lambda_.12
= control target key start
LH: loop header
LB: loop body
LE: loop exit
PB: predicated region body
PF: predicated region fallthrough
CT: control target
= control target key end

     0   :  { %s520_s6 = smov 0   ;;  %s600_s0 = inlined_call_operand.vmem [shape: bf16[16,96], index: 0, kind: input, shape index: {}]   ;;  %s601_s1 = inlined_call_operand.vmem [shape: bf16[16,32], index: 1, kind: output, shape index: {}]  }
   0x1 LB: > { %s435_s7 = sadd.s32 4294967295, %s495_s6   ;;  %p439_p0 = scmp.ge.s32.totalorder %s495_s6, 1  ;;  %s495_s6 = sphi %s520_s6, %s11_s6  }
   0x2   : > { %p86_p1 = scmp.lt.s32.totalorder %s495_s6, 3 }
   0x4   : > { %p87_p2 = pnand %p439_p0, %p86_p1 }
   0x5   : > { %p104_p3 = scmp.lt.s32.totalorder (!%p87_p2), %s435_s7, 1  ;;  %s497_s12 = smov (!%p87_p2), 96  }
   0x6   : > { %90 = sbr.rel (%p87_p2) target bundleno = 1151 (0x47f), region = 24  ;;  %s498_s13 = smov (!%p87_p2), 72  }
   0x7   : > { %s499_s14 = smov (!%p87_p2), 88   ;;  %s500_s15 = smov (!%p87_p2), 104  }
   0x8   : > { %s501_s16 = smov (!%p87_p2), 120   ;;  %s502_s17 = smov (!%p87_p2), 64  }
   0x9   : > { %s503_s18 = smov (!%p87_p2), 80   ;;  %s504_s19 = smov (!%p87_p2), 112  }
   0xa   : > { %s505_s20 = smov (!%p87_p2), 56   ;;  %s506_s21 = smov (!%p87_p2), 48  }
   0xb   : > { %s603_s7 = smov (!%p104_p3, %s435_s7), 1  ;;  %vm127_vm0 = vcmask 64512   ;;  %v113_v20 = vlaneseq  ;;  %vm165_vm2 = vcmask 1043456   ;;  %s507_s22 = smov 40   ;;  %vm246_vm3 = vcmask 125952  }
   0xc   : > { %s440_s8 = sshll.u32 %s603_s7, 2  ;;  %s508_s23 = smov 8   ;;  %vm380_vm4 = vcmask 257152  }
   0xd   : > { %s107_s11 = scalar_lea.vmem %s600_s0, %s440_s8  ;;  %v551_v21 = vshrl.u32 %v113_v20, 7  ;;  %v553_v22 = vand.u32 127, %v113_v20  ;;  %s111_s26 = scalar_lea.vmem %s601_s1, %s440_s8 }
   0xe   : > { %v118_v0 = vld [vmem:[%s107_s11] sm:$0xf]  ;;  %s509_s27 = smov 16  }
   0xf   : > { %v248_v1 = vld [vmem:[%s107_s11] sm:$0xf]  ;;  %v123_v2 = vunpack.c.l.b16 %v118_v0  ;;  %v119_v9 = vunpack.c.l.bf16 %v118_v0  ;;  %vm117_vm1 = vcmp.le.s32.totalorder %v553_v22, %v551_v21 }
  0x10   : > { %v256_v3 = vunpack.c.l.b16 %v248_v1  ;;  %v249_v4 = vunpack.c.l.bf16 %v248_v1 }
  0x11   : > { %v536_v5 = vpack.c.b16 %v123_v2, %v123_v2  ;;  %v120_v10 = vmul.f32 0.35355338, %v119_v9 }
  0x12   : > { %v538_v6 = vpack.c.b16 %v256_v3, %v256_v3  ;;  %v250_v7 = vmul.f32 0.35355338, %v249_v4 }
  0x13   : > { %125 = vrot.lane.b32.xlu0 %v536_v5, %s497_s12  ;;  %185 = vrot.lane.b32.xlu2 %v536_v5, %s499_s14  ;;  %v121_v11 = vpack.c.bf16 %v120_v10, %v120_v10 }
  0x14   : > { %315 = vrot.lane.b32.xlu1 %v538_v6, %s498_s13  ;;  %v251_v8 = vpack.c.bf16 %v250_v7, %v250_v7 }
  0x1c   : > { %313 = vrot.lane.b32.xlu1 %v251_v8, %s500_s15 }
  0x24   : > { %183 = vrot.lane.b32.xlu1 %v121_v11, %s501_s16 }
  0x2c   : > { %160 = vrot.lane.b32.xlu1 %v536_v5, %s502_s17 }
  0x34   : > { %258 = vrot.lane.b32.xlu1 %v538_v6, %s503_s18 }
  0x3c   : > { %253 = vrot.lane.b32.xlu1 %v251_v8, %s504_s19 }
  0x6d   : > { %v186_v12 = vpop.permute.xlu2 %185 }
  0x6e   : > { %v191_v13 = vsel %vm127_vm0, %v186_v12, 0 }
  0x6f   : > { %200 = vmatpush.bf16.xpose.msra.mxu2 %v191_v13 }
  0x85   : > { %v126_v14 = vpop.permute.xlu0 %125 }
  0x86   : > { %v316_v15 = vpop.permute.xlu1 %315  ;;  %v132_v16 = vsel %vm127_vm0, %v126_v14, 0 }
  0x87   : > { %v321_v17 = vsel %vm127_vm0, %v316_v15, 0  ;;  %141 = vmatpush.bf16.xpose.msra.mxu0 %v132_v16 }
  0x8e   : > { %442 = vmatmul.msk.bf16.vlgmr.msra.gmra.mxu0 %vm127_vm0, %v121_v11  ;;  %v314_v18 = vpop.permute.xlu1 %313 }
  0x8f   : > { %330 = vmatpush.bf16.xpose.msrb.mxu0 %v321_v17 }
  0x96   : > { %v184_v19 = vpop.permute.xlu1 %183 }
  0x97   : > { %444 = vmatmul.msk.bf16.vlgmr.msra.gmra.mxu2 %vm127_vm0, %v184_v19 }
  0x9e   : > { %448 = vmatmul.msk.bf16.vlgmr.msrb.gmra.mxu0 %vm127_vm0, %v314_v18  ;;  %v161_v32 = vpop.permute.xlu1 %160 }
  0x9f   : > { %v167_v48 = vsel %vm165_vm2, %v161_v32, 0 }
  0xa0   : > { %176 = vmatpush.bf16.msra.mxu1 %v167_v48 }
  0xa6   : > { %v259_v34 = vpop.permute.xlu1 %258 }
  0xa7   : > { %v264_v49 = vsel %vm127_vm0, %v259_v34, 0 }
  0xa8   : > { %273 = vmatpush.bf16.xpose.msrb.mxu1 %v264_v49 }
  0xae   : > { %v254_v38 = vpop.permute.xlu1 %253 }
 0x10b   : > { %v143_v23 = vpop.f32.mrf.mxu0 }
 0x10c   : > { %v147_v24 = vsel %vm117_vm1, %v143_v23, -3.4028235e+38 }
 0x10d   : > { %v148_v25 = vsel %vm127_vm0, %v147_v24, -inf }
 0x10e   : > { %149 = vmax.xlane.f32.xlu0 %v148_v25 }
 0x113   : > { %v145_v26 = vpop.f32.mrf.mxu0 }
 0x11a   : > { %v202_v31 = vpop.f32.mrf.mxu2 }
 0x11b   : > { %v332_v27 = vpop.f32.mrf.mxu0  ;;  %v206_v41 = vsel %vm117_vm1, %v202_v31, -3.4028235e+38 }
 0x11c   : > { %v336_v28 = vsel %vm117_vm1, %v332_v27, -3.4028235e+38  ;;  %v207_v44 = vsel %vm127_vm0, %v206_v41, -inf }
 0x11d   : > { %v337_v29 = vsel %vm127_vm0, %v336_v28, -inf }
 0x11e   : > { %338 = vmax.xlane.f32.xlu1 %v337_v29 }
 0x122   : > { %v204_v33 = vpop.f32.mrf.mxu2 }
 0x123   : > { %v334_v30 = vpop.f32.mrf.mxu0 }
 0x137   : > { %292 = vrot.lane.b32.xlu1 %v538_v6, %s506_s21 }
 0x181   : > { %v150_v35 = vpop.xlane.xlu0 %149 }
 0x182   : > { %v151_v36 = vsub.f32 %v147_v24, %v150_v35 }
 0x184   : > { %v152_v37 = vmul.f32 1.442695, %v151_v36 }
 0x186   : > { %473 = vpow2.f32 %v152_v37 }
 0x18c   : > { %v474_v39 = vpop.eup %473 }
 0x18d   : > { %v154_v40 = vsel %vm127_vm0, %v474_v39, 0.0 }
 0x18e   : > { %155 = vadd.xlane.f32.xlu2 %v154_v40 }
 0x191   : > { %v339_v42 = vpop.xlane.xlu1 %338 }
 0x192   : > { %v340_v43 = vsub.f32 %v336_v28, %v339_v42 }
 0x194   : > { %v341_v45 = vmul.f32 1.442695, %v340_v43 }
 0x196   : > { %208 = vmax.xlane.f32.xlu2 %v207_v44  ;;  %475 = vpow2.f32 %v341_v45 }
 0x19c   : > { %v476_v46 = vpop.eup %475 }
 0x19d   : > { %v343_v47 = vsel %vm127_vm0, %v476_v46, 0.0 }
 0x19e   : > { %344 = vadd.xlane.f32.xlu2 %v343_v47 }
 0x1a9   : > { %v293_v9 = vpop.permute.xlu1 %292 }
 0x1aa   : > { %v298_v10 = vsel %vm165_vm2, %v293_v9, 0 }
 0x201   : > { %v156_v50 = vpop.xlane.xlu2 %155 }
 0x202   : > { %477 = vrcp.f32 %v156_v50 }
 0x208   : > { %v478_v51 = vpop.eup %477 }
 0x209   : > { %v209_v52 = vpop.xlane.xlu2 %208  ;;  %v158_v53 = vmul.f32 %v478_v51, %v474_v39 }
 0x20a   : > { %v210_v54 = vsub.f32 %v206_v41, %v209_v52 }
 0x20b   : > { %v159_v55 = vpack.c.bf16 %v158_v53, %v158_v53 }
 0x20c   : > { %v211_v56 = vmul.f32 1.442695, %v210_v54 }
 0x20d   : > { %443 = vmatmul.msk.bf16.vlgmr.msra.gmra.mxu1 %vm127_vm0, %v159_v55 }
 0x20e   : > { %479 = vpow2.f32 %v211_v56 }
 0x211   : > { %v345_v59 = vpop.xlane.xlu2 %344 }
 0x214   : > { %v480_v57 = vpop.eup %479 }
 0x215   : > { %v213_v58 = vsel %vm127_vm0, %v480_v57, 0.0 }
 0x216   : > { %214 = vadd.xlane.f32.xlu2 %v213_v58 }
 0x21d   : > { %446 = vmatmul.msk.bf16.vlgmr.msrb.gmra.mxu1 %vm127_vm0, %v254_v38 }
 0x22e   : > { %219 = vrot.lane.b32.xlu2 %v536_v5, %s505_s20 }
 0x289   : > { %v215_v60 = vpop.xlane.xlu2 %214 }
 0x28a   : > { %481 = vrcp.f32 %v215_v60  ;;  %v178_v61 = vpop.f32.mrf.mxu1 }
 0x290   : > { %v482_v62 = vpop.eup %481 }
 0x291   : > { %v220_v63 = vpop.permute.xlu2 %219  ;;  %v217_v0 = vmul.f32 %v482_v62, %v480_v57 }
 0x292   : > { %v180_v1 = vpop.f32.mrf.mxu1  ;;  %v225_v2 = vsel %vm165_vm2, %v220_v63, 0 }
 0x293   : > { %234 = vmatpush.bf16.msra.mxu3 %v225_v2  ;;  %v218_v3 = vpack.c.bf16 %v217_v0, %v217_v0 }
 0x296   : > { %445 = vmatmul.msk.bf16.vlgmr.msra.gmra.mxu3 %vm127_vm0, %v218_v3 }
 0x297   : > { %307 = vmatpush.bf16.msrb.mxu3 %v298_v10 }
 0x29a   : > { %v275_v4 = vpop.f32.mrf.mxu1 }
 0x29b   : > { %v279_v5 = vsel %vm117_vm1, %v275_v4, -3.4028235e+38 }
 0x29c   : > { %v280_v7 = vsel %vm127_vm0, %v279_v5, -inf }
 0x29d   : > { %281 = vmax.xlane.f32.xlu0 %v280_v7 }
 0x2a2   : > { %v277_v8 = vpop.f32.mrf.mxu1 }
 0x2b1   : > { %349 = vrot.lane.b32.xlu0 %v538_v6, %s507_s22 }
 0x310   : > { %v282_v11 = vpop.xlane.xlu0 %281 }
 0x311   : > { %v283_v12 = vsub.f32 %v279_v5, %v282_v11 }
 0x313   : > { %v284_v13 = vmul.f32 1.442695, %v283_v12 }
 0x315   : > { %483 = vpow2.f32 %v284_v13 }
 0x316   : > { %485 = vrcp.f32 %v345_v59 }
 0x319   : > { %v236_v14 = vpop.f32.mrf.mxu3 }
 0x31b   : > { %v484_v15 = vpop.eup %483 }
 0x31c   : > { %v286_v16 = vsel %vm127_vm0, %v484_v15, 0.0  ;;  %v486_v17 = vpop.eup %485 }
 0x31d   : > { %287 = vadd.xlane.f32.xlu0 %v286_v16  ;;  %v347_v19 = vmul.f32 %v486_v17, %v476_v46 }
 0x31f   : > { %v348_v21 = vpack.c.bf16 %v347_v19, %v347_v19 }
 0x321   : > { %v238_v18 = vpop.f32.mrf.mxu3 }
 0x323   : > { %v350_v20 = vpop.permute.xlu0 %349 }
 0x324   : > { %v355_v6 = vsel %vm165_vm2, %v350_v20, 0 }
 0x325   : > { %364 = vmatpush.bf16.msrb.mxu2 %v355_v6 }
 0x328   : > { %449 = vmatmul.msk.bf16.vlgmr.msrb.gmra.mxu2 %vm127_vm0, %v348_v21 }
 0x390   : > { %v288_v22 = vpop.xlane.xlu0 %287 }
 0x391   : > { %487 = vrcp.f32 %v288_v22 }
 0x397   : > { %v488_v23 = vpop.eup %487 }
 0x398   : > { %v290_v24 = vmul.f32 %v488_v23, %v484_v15 }
 0x39a   : > { %v291_v25 = vpack.c.bf16 %v290_v24, %v290_v24 }
 0x39c   : > { %447 = vmatmul.msk.bf16.vlgmr.msrb.gmra.mxu3 %vm127_vm0, %v291_v25 }
 0x3ab   : > { %v366_v26 = vpop.f32.mrf.mxu2 }
 0x3ac   : > { %371 = vrot.lane.b32.xlu2 %v366_v26, %s508_s23 }
 0x3b3   : > { %v368_v27 = vpop.f32.mrf.mxu2 }
 0x3b4   : > { %241 = vrot.lane.b32.xlu2 %v236_v14, %s508_s23 }
 0x406   : > { %v372_v28 = vpop.permute.xlu2 %371 }
 0x40e   : > { %v242_v29 = vpop.permute.xlu2 %241 }
 0x40f   : > { %v244_v30 = vsel %vm127_vm0, %v178_v61, %v242_v29 }
 0x410   : > { %v245_v31 = vpack.c.bf16 %v244_v30, %v244_v30 }
 0x412   : > { %247 = vst.msk [vmem:[%s111_s26] sm:$0xf] %vm246_vm3, %v245_v31 }
 0x41f   : > { %v309_v32 = vpop.f32.mrf.mxu3 }
 0x420   : > { %v374_v33 = vsel %vm127_vm0, %v309_v32, %v372_v28 }
 0x421   : > { %v375_v34 = vpack.c.bf16 %v374_v33, %v374_v33 }
 0x423   : > { %377 = vrot.lane.b32.xlu2 %v375_v34, %s509_s27 }
 0x427   : > { %v311_v35 = vpop.f32.mrf.mxu3 }
 0x47d   : > { %v378_v36 = vpop.permute.xlu2 %377 }
 0x47e   : > { %381 = vst.msk [vmem:[%s111_s26] sm:$0xf] %vm380_vm4, %v378_v36 }
 0x47f PF: > { %s11_s6 = sadd.s32 1, %s495_s6  }
 0x480   : > { %p8_p4 = scmp.ge.s32.totalorder %s11_s6, 4  }
 0x482   :  { %10 = sbr.rel (!%p8_p4) target bundleno = 1 (0x1), region = 54 }

// kernel: _lambda_.14
= control target key start
LH: loop header
LB: loop body
LE: loop exit
PB: predicated region body
PF: predicated region fallthrough
CT: control target
= control target key end

     0   :  { %s595_s18 = smov 0   ;;  %s597_s19 = smov 0   ;;  %s653_s0 = inlined_call_operand.vmem [shape: bf16[16,32], index: 0, kind: input, shape index: {}]   ;;  %s654_s1 = inlined_call_operand.vmem [shape: f32[1,32], index: 1, kind: input, shape index: {}]   ;;  %s655_s2 = inlined_call_operand.vmem [shape: f32[1,32], index: 2, kind: input, shape index: {}]   ;;  %s656_s3 = inlined_call_operand.vmem [shape: bf16[32,128], index: 3, kind: input, shape index: {}]   ;;  %s657_s4 = inlined_call_operand.vmem [shape: f32[1,128], index: 4, kind: input, shape index: {}]   ;;  %s658_s5 = inlined_call_operand.vmem [shape: bf16[16,128], index: 5, kind: output, shape index: {}]  }
   0x1   :  { %s599_s20 = smov 0  }
   0x2 LB: > { %s27_s21 = sadd.s32 1, %s558_s19  ;;  %p487_p0 = scmp.ge.s32.totalorder %s562_s20, 1  ;;  %s562_s20 = sphi %s599_s20, %s15_s20   ;;  %s558_s19 = sphi %s597_s19, %s660_s19   ;;  %s554_s18 = sphi %s595_s18, %s659_s18  }
   0x3   : > { %p29_p1 = scmp.ge.s32.totalorder %s27_s21, 2  ;;  %p217_p2 = scmp.lt.s32.totalorder %s562_s20, 3 }
   0x5   : > { %s662_s21 = smov (%p29_p1, %s27_s21), 0  ;;  %p218_p3 = pnand %p487_p0, %p217_p2 }
   0x6   : > { %p253_p4 = scmp.lt.s32.totalorder (!%p218_p3), %s554_s18, 1 }
   0x7   : > { %221 = sbr.rel (%p218_p3) target bundleno = 459 (0x1cb), region = 40 }
   0xc   : > { %s664_s18 = smov (!%p253_p4, %s554_s18), 1  ;;  %vm278_vm0 = vcmask 261120   ;;  %v564_v3 = vmov 32.0   ;;  %v503_v15 = vld [vmem:[%s656_s3 + $0x8] sm:$0xff]  ;;  %v502_v17 = vld [vmem:[%s656_s3] sm:$0xff]  ;;  %vm319_vm5 = vcmask 257024  }
   0xd   : > { %s488_s22 = sshll.u32 %s664_s18, 2  ;;  %532 = vrcp.f32 %v564_v3  ;;  %352 = vmatpush.bf16.msra.mxu0 %v503_v15  ;;  %v529_v26 = vld [vmem:[%s654_s1] ss:$0 sm:$0xff] }
   0xe   : > { %s256_s25 = scalar_lea.vmem %s653_s0, %s488_s22  ;;  %v530_v28 = vld [vmem:[%s655_s2] ss:$0 sm:$0xff]  ;;  %s270_s13 = scalar_lea.vmem %s658_s5, %s488_s22 }
   0xf   : > { %v276_v0 = vld [vmem:[%s256_s25] sm:$0xf] }
  0x10   : > { %v277_v1 = vunpack.c.l.bf16 %v276_v0  ;;  %v531_v34 = vld [vmem:[%s657_s4] ss:$0 sm:$0xff] }
  0x11   : > { %353 = vmatpush.bf16.msra.mxu0 %v502_v17 }
  0x12   : > { %v279_v2 = vsel %vm278_vm0, %v277_v1, 0.0 }
  0x13   : > { %280 = vadd.xlane.f32.xlu0 %v279_v2  ;;  %v533_v4 = vpop.eup %532 }
  0x14   : > { %v283_v5 = vmul.f32 32.0, %v533_v4  ;;  %vm287_vm1 = vweird.f32 %v533_v4 }
  0x16   : > { %v284_v6 = vsub.f32 1.0, %v283_v5 }
  0x18   : > { %v285_v7 = vmul.f32 %v533_v4, %v284_v6 }
  0x1a   : > { %v286_v8 = vadd.f32 %v533_v4, %v285_v7 }
  0x1c   : > { %v288_v9 = vsel %vm287_vm1, %v533_v4, %v286_v8 }
  0x86   : > { %v281_v10 = vpop.xlane.xlu0 %280 }
  0x87   : > { %v289_v11 = vmul.f32 %v288_v9, %v281_v10 }
  0x89   : > { %v290_v12 = vsub.f32 %v277_v1, %v289_v11 }
  0x8b   : > { %v291_v13 = vmul.f32 %v290_v12, %v290_v12 }
  0x8d   : > { %v292_v14 = vsel %vm278_vm0, %v291_v13, 0.0 }
  0x8e   : > { %293 = vadd.xlane.f32.xlu0 %v292_v14 }
 0x101   : > { %v294_v16 = vpop.xlane.xlu0 %293 }
 0x102   : > { %v295_v18 = vmul.f32 %v294_v16, %v288_v9 }
 0x104   : > { %v296_v19 = vadd.f32 1e-05, %v295_v18 }
 0x106   : > { %534 = vrsqrt.f32 %v296_v19  ;;  %vm303_vm3 = vweird.f32 %v296_v19 }
 0x10c   : > { %v535_v20 = vpop.eup %534 }
 0x10d   : > { %v298_v21 = vmul.f32 %v535_v20, %v296_v19  ;;  %vm304_vm2 = vweird.f32 %v535_v20 }
 0x10e   : > { %vm305_vm4 = vmor %vm303_vm3, %vm304_vm2 }
 0x10f   : > { %v299_v22 = vmul.f32 %v535_v20, %v298_v21 }
 0x111   : > { %v300_v23 = vmul.f32 0.5, %v299_v22 }
 0x113   : > { %v301_v24 = vsub.f32 1.5, %v300_v23 }
 0x115   : > { %v302_v25 = vmul.f32 %v535_v20, %v301_v24 }
 0x117   : > { %v306_v27 = vsel %vm305_vm4, %v535_v20, %v302_v25 }
 0x118   : > { %v307_v29 = vmul.f32 %v306_v27, %v290_v12 }
 0x11a   : > { %v312_v30 = vmul.f32 %v529_v26, %v307_v29 }
 0x11c   : > { %v317_v31 = vadd.f32 %v530_v28, %v312_v30 }
 0x11e   : > { %v318_v32 = vpack.c.bf16 %v317_v31, %v317_v31 }
 0x120   : > { %320 = vst.msk [vmem:[#allocation2] sm:$0xf] %vm319_vm5, %v318_v32 }
 0x127   : > { %v321_v33 = vld [vmem:[#allocation2] sm:$0xf] }
 0x128   : > { %498 = vmatmul.msk.bf16.vlgmr.msra.gmra.mxu0 %vm278_vm0, %v321_v33 }
 0x1a5   : > { %v355_v35 = vpop.f32.mrf.mxu0 }
 0x1a6   : > { %v356_v36 = vadd.f32 %v531_v34, %v355_v35 }
 0x1a8   : > { %v499_v37 = vmul.f32 -1.702, %v356_v36 }
 0x1aa   : > { %v361_v38 = vmul.f32 1.442695, %v499_v37 }
 0x1ac   : > { %536 = vpow2.f32 %v361_v38 }
 0x1ad   : > { %v357_v39 = vpop.f32.mrf.mxu0 }
 0x1b2   : > { %v537_v40 = vpop.eup %536 }
 0x1b3   : > { %v363_v41 = vadd.f32 1.0, %v537_v40 }
 0x1b5   : > { %538 = vrcp.f32 %v363_v41  ;;  %v375_v45 = vand.u32 2147483648, %v363_v41  ;;  %v373_v47 = vand.u32 2147483647, %v363_v41  ;;  %vm369_vm7 = vweird.f32 %v363_v41 }
 0x1b7   : > { %v376_v49 = vor.u32 1.1754944e-38, %v375_v45  ;;  %vm374_vm9 = vcmp.eq.f32.partialorder %v373_v47, 8.507059e+37 }
 0x1bb   : > { %v539_v42 = vpop.eup %538 }
 0x1bc   : > { %v365_v43 = vmul.f32 %v539_v42, %v363_v41  ;;  %vm370_vm6 = vweird.f32 %v539_v42 }
 0x1bd   : > { %vm371_vm8 = vmor %vm369_vm7, %vm370_vm6 }
 0x1be   : > { %v366_v44 = vsub.f32 1.0, %v365_v43 }
 0x1c0   : > { %v367_v46 = vmul.f32 %v539_v42, %v366_v44 }
 0x1c2   : > { %v368_v48 = vadd.f32 %v539_v42, %v367_v46 }
 0x1c4   : > { %v372_v50 = vsel %vm371_vm8, %v539_v42, %v368_v48 }
 0x1c5   : > { %v377_v51 = vsel %vm374_vm9, %v376_v49, %v372_v50 }
 0x1c6   : > { %v379_v52 = vmul.f32 %v377_v51, %v356_v36 }
 0x1c8   : > { %v380_v53 = vpack.c.bf16 %v379_v52, %v379_v52 }
 0x1ca   : > { %381 = vst [vmem:[%s270_s13] sm:$0xf] %v380_v53 }
 0x1cb PF: > { %s15_s20 = sadd.s32 1, %s562_s20   ;;  %s659_s18 = smov %s558_s19 }
 0x1cc   : > { %p12_p5 = scmp.ge.s32.totalorder %s15_s20, 4   ;;  %s660_s19 = smov %s662_s21 }
 0x1ce   :  { %14 = sbr.rel (!%p12_p5) target bundleno = 2 (0x2), region = 80 }

// kernel: _lambda_.15
= control target key start
LH: loop header
LB: loop body
LE: loop exit
PB: predicated region body
PF: predicated region fallthrough
CT: control target
= control target key end

     0   :  { %s660_s15 = smov 0   ;;  %s662_s16 = smov 0   ;;  %s725_s0 = inlined_call_operand.vmem [shape: bf16[16,128], index: 0, kind: input, shape index: {}]   ;;  %s726_s1 = inlined_call_operand.vmem [shape: bf16[128,32], index: 1, kind: input, shape index: {}]   ;;  %s727_s2 = inlined_call_operand.vmem [shape: f32[1,32], index: 2, kind: input, shape index: {}]   ;;  %s728_s3 = inlined_call_operand.vmem [shape: bf16[16,32], index: 3, kind: input, shape index: {}]   ;;  %s729_s4 = inlined_call_operand.vmem [shape: bf16[16,32], index: 4, kind: output, shape index: {}]  }
   0x1   :  { %s664_s17 = smov 0  }
   0x2 LB: > { %s33_s18 = sadd.s32 1, %s628_s16  ;;  %p538_p0 = scmp.ge.s32.totalorder %s632_s17, 1  ;;  %s632_s17 = sphi %s664_s17, %s14_s17   ;;  %s628_s16 = sphi %s662_s16, %s731_s16   ;;  %s624_s15 = sphi %s660_s15, %s730_s15  }
   0x3   : > { %p35_p1 = scmp.ge.s32.totalorder %s33_s18, 2  ;;  %p225_p2 = scmp.lt.s32.totalorder %s632_s17, 3 }
   0x5   : > { %s733_s18 = smov (%p35_p1, %s33_s18), 0  ;;  %p226_p3 = pnand %p538_p0, %p225_p2 }
   0x6   : > { %p273_p4 = scmp.lt.s32.totalorder (!%p226_p3), %s624_s15, 1 }
   0x7   : > { %229 = sbr.rel (%p226_p3) target bundleno = 187 (0xbb), region = 36 }
   0xc   : > { %v583_v0 = vld [vmem:[%s726_s1 + $0x38] sm:$0xff]  ;;  %vm310_vm0 = vcmask 261120   ;;  %v582_v1 = vld [vmem:[%s726_s1 + $0x30] sm:$0xff]  ;;  %v634_v2 = vmov 0.0   ;;  %v581_v3 = vld [vmem:[%s726_s1 + $0x28] sm:$0xff]  ;;  %s735_s15 = smov (!%p273_p4, %s624_s15), 1 }
   0xd   : > { %378 = vmatpush.bf16.msra.mxu0 %v583_v0  ;;  %311 = vst.msk [vmem:[#allocation2] sm:$0xff] %vm310_vm0, %v634_v2  ;;  %v580_v4 = vld [vmem:[%s726_s1 + $0x20] sm:$0xff]  ;;  %v579_v5 = vld [vmem:[%s726_s1 + $0x18] sm:$0xff]  ;;  %v578_v6 = vld [vmem:[%s726_s1 + $0x10] sm:$0xff]  ;;  %s539_s7 = sshll.u32 %s735_s15, 2  ;;  %vm407_vm1 = vcmask 257024  }
   0xe   : > { %v577_v7 = vld [vmem:[%s726_s1 + $0x8] sm:$0xff]  ;;  %v576_v8 = vld [vmem:[%s726_s1] sm:$0xff]  ;;  %s279_s12 = scalar_lea.vmem %s725_s0, %s539_s7  ;;  %s298_s19 = scalar_lea.vmem %s728_s3, %s539_s7 }
   0xf   : > { %v313_v9 = vld [vmem:[%s279_s12] sm:$0xf]  ;;  %s305_s23 = scalar_lea.vmem %s729_s4, %s539_s7 }
  0x10   : > { %v403_v13 = vld [vmem:[%s298_s19] sm:$0xf] }
  0x11   : > { %379 = vmatpush.bf16.msra.mxu0 %v582_v1  ;;  %v609_v14 = vld [vmem:[%s727_s2] ss:$0 sm:$0xff]  ;;  %v404_v16 = vunpack.c.l.bf16 %v403_v13 }
  0x14   : > { %v312_v10 = vld [vmem:[#allocation2] sm:$0xff] }
  0x15   : > { %380 = vmatpush.bf16.msra.mxu0 %v581_v3 }
  0x19   : > { %381 = vmatpush.bf16.msra.mxu0 %v580_v4 }
  0x1d   : > { %382 = vmatpush.bf16.msra.mxu0 %v579_v5 }
  0x21   : > { %383 = vmatpush.bf16.msra.mxu0 %v578_v6 }
  0x25   : > { %384 = vmatpush.bf16.msra.mxu0 %v577_v7 }
  0x29   : > { %385 = vmatpush.bf16.msra.mxu0 %v576_v8 }
  0x2c   : > { %386 = vmatmul.bf16.vlgmr.msra.gmra.mxu0 %v313_v9 }
  0xa9   : > { %v387_v11 = vpop.f32.mrf.mxu0 }
  0xaa   : > { %v391_v12 = vadd.f32 %v387_v11, %v312_v10 }
  0xac   : > { %393 = vst.msk [vmem:[#allocation2] sm:$0xff] %vm310_vm0, %v391_v12 }
  0xb1   : > { %v389_v15 = vpop.f32.mrf.mxu0 }
  0xb3   : > { %v397_v17 = vld [vmem:[#allocation2] sm:$0xff] }
  0xb4   : > { %v402_v18 = vadd.f32 %v609_v14, %v397_v17 }
  0xb6   : > { %v405_v19 = vadd.f32 %v404_v16, %v402_v18 }
  0xb8   : > { %v406_v20 = vpack.c.bf16 %v405_v19, %v405_v19 }
  0xba   : > { %408 = vst.msk [vmem:[%s305_s23] sm:$0xf] %vm407_vm1, %v406_v20 }
  0xbb PF: > { %s14_s17 = sadd.s32 1, %s632_s17   ;;  %s730_s15 = smov %s628_s16 }
  0xbc   : > { %p11_p5 = scmp.ge.s32.totalorder %s14_s17, 4   ;;  %s731_s16 = smov %s733_s18 }
  0xbe   :  { %13 = sbr.rel (!%p11_p5) target bundleno = 2 (0x2), region = 83 }

// kernel: _lambda_.21
= control target key start
LH: loop header
LB: loop body
LE: loop exit
PB: predicated region body
PF: predicated region fallthrough
CT: control target
= control target key end

     0   :  { %8 = vsyncpa [#allocation3], 0  ;;  %s519_s0 = inlined_call_operand.vmem [shape: bf16[16,32], index: 0, kind: input, shape index: {}]   ;;  %s520_s1 = inlined_call_operand.vmem [shape: f32[1,32], index: 1, kind: input, shape index: {}]   ;;  %s521_s2 = inlined_call_operand.vmem [shape: f32[1,32], index: 2, kind: input, shape index: {}]   ;;  %s522_s3 = inlined_call_operand.hbm [shape: f32[16,32], index: 3, kind: output, shape index: {}]  }
   0x1   :  { %10 = vsyncpa [#allocation3 + $0x1], 0  ;;  %s425_s12 = smov 0   ;;  %s427_s13 = smov 0  }
   0x2   :  { %s429_s14 = smov 0   ;;  %s431_s15 = smov 0  }
   0x3 LB: > { %s446_s16 = sadd.s32 4294967295, %s402_s15   ;;  %s284_s17 = sadd.s32 4294967294, %s402_s15   ;;  %s402_s15 = sphi %s431_s15, %s528_s15   ;;  %s398_s14 = sphi %s429_s14, %s527_s14   ;;  %s394_s13 = sphi %s427_s13, %s526_s13   ;;  %s390_s12 = sphi %s425_s12, %s525_s12  }
   0x4   : > { %s450_s18 = sadd.s32 1, %s402_s15   ;;  %s91_s19 = sadd.s32 1, %s398_s14 }
   0x5   : > { %s88_s20 = ssub.s32 %s402_s15, %s450_s18  ;;  %p101_p0 = scmp.ne.s32.totalorder %s398_s14, %s394_s13 }
   0x6   : > { %p89_p1 = scmp.eq.s32.totalorder %s88_s20, 0  ;;  %p102_p2 = scmp.eq.s32.totalorder %s446_s16, 1 }
   0x7   : > { %p107_p3 = scmp.ne.s32.totalorder %s394_s13, %s390_s12  ;;  %p108_p4 = scmp.eq.s32.totalorder %s284_s17, 1 }
   0x8   : > { %s461_s21 = scalar_select %p89_p1, %s398_s14, %s91_s19  }
   0x9   : > { %p463_p5 = por %p102_p2, %p101_p0  ;;  %p467_p6 = por %p108_p4, %p107_p3 }
   0xa   : > { %p287_p7 = scmp.ge.s32.totalorder %s402_s15, 1  ;;  %p139_p8 = scmp.lt.s32.totalorder %s402_s15, 3 }
   0xc   : > { %p140_p9 = pnand %p287_p7, %p139_p8 }
   0xd   : > { %p162_p10 = scmp.lt.s32.totalorder (!%p140_p9), %s446_s16, 1  ;;  %s159_s29 = sand.u32 (!%p140_p9), 1, %s394_s13  }
   0xe   : > { %143 = sbr.rel (%p140_p9) target bundleno = 297 (0x129), region = 32  ;;  %s288_s30 = sshll.u32 (!%p140_p9), %s159_s29, 3 }
   0xf   : > { %s291_s4 = sshll.u32 (!%p140_p9), %s446_s16, 3  ;;  %s161_s17 = scalar_lea.vmem (!%p140_p9), [#allocation2], %s288_s30 }
  0x10   : > { %s220_s9 = scalar_lea.hbm (!%p140_p9), %s522_s3, %s291_s4  ;;  %s210_s20 = scalar_lea.sflag (!%p140_p9), [#allocation3], %s159_s29 }
  0x11   : > { %s224_s19 = sshll.u32 (!%p140_p9), %s220_s9, 4  ;;  %s225_s19 = int_to_ptr.hbm [resolvable:$true] %s224_s19 }
  0x13   : > { %s163_s24 = scalar_select %p162_p10, %s446_s16, 1  ;;  %vm168_vm0 = vcmask 261120   ;;  %v404_v3 = vmov 32.0   ;;  %v334_v24 = vld [vmem:[%s520_s1] ss:$0 sm:$0xff] }
  0x14   : > { %336 = vrcp.f32 %v404_v3  ;;  %v335_v27 = vld [vmem:[%s521_s2] ss:$0 sm:$0xff]  ;;  %s222_s16 = sshll.u32 %s161_s17, 4  ;;  %s223_s16 = int_to_ptr.vmem [resolvable:$true] %s222_s16 }
  0x15   : > { %s289_s25 = sshll.u32 %s163_s24, 2  ;;  %s354_s24 = sshra.s32 %s225_s19, 4  ;;  %s355_s24 = int_to_ptr.hbm [resolvable:$true] %s354_s24 }
  0x16   : > { %s165_s28 = scalar_lea.vmem %s519_s0, %s289_s25  ;;  %s356_s25 = scalar_lea.hbm %s355_s24, 8 }
  0x17   : > { %v166_v0 = vld [vmem:[%s165_s28] sm:$0xf]  ;;  %p357_p11 = scmp.ne.s32.totalorder %s355_s24, %s356_s25  ;;  %s360_s28 = scalar_lea.hbm %s522_s3, 16 }
  0x18   : > { %v167_v1 = vunpack.c.l.bf16 %v166_v0  ;;  %p361_p0 = scmp.lt.s32.totalorder %s355_s24, %s522_s3  ;;  %p362_p1 = scmp.lt.s32.totalorder %s360_s28, %s356_s25 }
  0x19   : > { %p358_p12 = pnand %p357_p11, %p463_p5 }
  0x1a   : > { %v169_v2 = vsel %vm168_vm0, %v167_v1, 0.0  ;;  %v337_v4 = vpop.eup %336  ;;  %p363_p2 = por %p362_p1, %p361_p0 }
  0x1b   : > { %170 = vadd.xlane.f32.xlu0 %v169_v2  ;;  %v173_v5 = vmul.f32 32.0, %v337_v4  ;;  %vm177_vm1 = vweird.f32 %v337_v4  ;;  %p359_p13 = pneg %p358_p12 }
  0x1d   : > { %v174_v6 = vsub.f32 1.0, %v173_v5  ;;  %p364_p3 = pnand %p363_p2, %p359_p13 }
  0x1f   : > { %v175_v7 = vmul.f32 %v337_v4, %v174_v6 }
  0x21   : > { %v176_v8 = vadd.f32 %v337_v4, %v175_v7 }
  0x23   : > { %v178_v9 = vsel %vm177_vm1, %v337_v4, %v176_v8 }
  0x8e   : > { %v171_v10 = vpop.xlane.xlu0 %170 }
  0x8f   : > { %v179_v11 = vmul.f32 %v178_v9, %v171_v10 }
  0x91   : > { %v180_v12 = vsub.f32 %v167_v1, %v179_v11 }
  0x93   : > { %v181_v13 = vmul.f32 %v180_v12, %v180_v12 }
  0x95   : > { %v182_v14 = vsel %vm168_vm0, %v181_v13, 0.0 }
  0x96   : > { %183 = vadd.xlane.f32.xlu0 %v182_v14 }
 0x109   : > { %v184_v15 = vpop.xlane.xlu0 %183 }
 0x10a   : > { %v185_v16 = vmul.f32 %v184_v15, %v178_v9 }
 0x10c   : > { %v186_v17 = vadd.f32 1e-05, %v185_v16 }
 0x10e   : > { %338 = vrsqrt.f32 %v186_v17  ;;  %vm193_vm3 = vweird.f32 %v186_v17 }
 0x114   : > { %v339_v18 = vpop.eup %338 }
 0x115   : > { %v188_v19 = vmul.f32 %v339_v18, %v186_v17  ;;  %vm194_vm2 = vweird.f32 %v339_v18 }
 0x116   : > { %vm195_vm4 = vmor %vm193_vm3, %vm194_vm2 }
 0x117   : > { %v189_v20 = vmul.f32 %v339_v18, %v188_v19 }
 0x119   : > { %v190_v21 = vmul.f32 0.5, %v189_v20 }
 0x11b   : > { %v191_v22 = vsub.f32 1.5, %v190_v21 }
 0x11d   : > { %v192_v23 = vmul.f32 %v339_v18, %v191_v22 }
 0x11f   : > { %v196_v25 = vsel %vm195_vm4, %v339_v18, %v192_v23 }
 0x120   : > { %v197_v26 = vmul.f32 %v196_v25, %v180_v12 }
 0x122   : > { %v202_v28 = vmul.f32 %v334_v24, %v197_v26 }
 0x124   : > { %v207_v29 = vadd.f32 %v335_v27, %v202_v28 }
 0x126   : > { %208 = vst.msk [vmem:[%s161_s17] sm:$0xff] %vm168_vm0, %v207_v29 }
 0x127   : > { %367 = shalt.err (!%p364_p3)
}
 0x128   : > { %294 = dma.vmem_to_hbm [thread:$0]  (%p463_p5), %s223_s16, 128, %s225_s19, %s210_s20  }
 0x129 PF: > { %p300_p4 = scmp.ge.s32.totalorder %s402_s15, 2  ;;  %s236_s29 = sand.u32 1, %s390_s12  }
 0x12a   : > { %s237_s5 = scalar_lea.sflag [#allocation3], %s236_s29 }
 0x12b   : > { %p297_p7 = pnand %p300_p4, %p467_p6 }
 0x12d   : > { %p298_p8 = pneg %p297_p7 }
 0x12f   : > { %385 = dma.done.wait (%p298_p8), %s237_s5, 128  }
 0x130   : > { %387 = vsyncadd (%p298_p8), %s237_s5, 4294967168  ;;  %p13_p9 = scmp.ge.s32.totalorder %s450_s18, 4   ;;  %s525_s12 = smov %s394_s13 }
 0x131   : > { %s526_s13 = smov %s398_s14  ;;  %s527_s14 = smov %s461_s21 }
 0x132   : > { %s528_s15 = smov %s450_s18  ;;  %15 = sbr.rel (!%p13_p9) target bundleno = 3 (0x3), region = 67 }
 0x137   :  { %243 = vsyncpa [#allocation3], 1 }
 0x138   :  { %245 = vsyncpa [#allocation3 + $0x1], 1 }

</bundles_post_ra>
